<compile_context>
chip_gen: v7x
topology: tpu7x:2x2x1
jax: 0.10.0
libtpu: 0.0.40
codegen_flags: <defaults>
</compile_context>

<pallas_src>
import functools

import jax
import jax.numpy as jnp
from jax.experimental import pallas as pl
from jax.experimental.pallas import tpu as pltpu


# ----------------------------- fused kernel -------------------------------- #

def _selector2_kernel(x_ref, w1_ref, wc_ref, bc_ref, gamma_ref, beta_ref,
                      alpha_ref, w2_ref, b2_ref, o_ref, hpad_ref,
                      *, dilations, K, filters, pad_max, eps=1e-5):
    # x_ref:    (1, S, Din)                input block for this batch element
    # w1_ref:   (Din, F)       bf16        dense1 weight (no bias)
    # wc_ref:   (NB, K*F, 2F)  bf16        stacked conv taps, im2col layout
    # bc_ref:   (NB, 1, 2F)    f32         conv biases
    # gamma/beta: (NB, 1, F)   f32         LayerNorm affine
    # alpha_ref:(NB,)          f32 SMEM    residual scales
    # w2_ref:   (1, F)         f32         dense2 weight row
    # b2_ref:   (1,)           f32 SMEM    dense2 bias
    # o_ref:    (1, 1, S)                  lane-dense sigmoid output
    # hpad_ref: (S + 2*pad_max, F) f32     VMEM-resident padded activation
    S = x_ref.shape[1]
    F = filters

    # ---- dense1: (S, Din) @ (Din, F), bf16 in / f32 accumulate ----
    x = x_ref[0].astype(jnp.bfloat16)
    h0 = jnp.dot(x, w1_ref[...], preferred_element_type=jnp.float32)     # (S, F) f32

    # Zero the halo once, park the activation in the center of the padded scratch.
    hpad_ref[...] = jnp.zeros_like(hpad_ref)
    hpad_ref[pad_max:pad_max + S, :] = h0

    # ---- 6 residual gated conv blocks, all VMEM resident ----
    for blk, dil in enumerate(dilations):                 # static unroll (NB = 6)
        pad_b = dil * (K - 1) // 2
        # im2col: K dilated (S, F) slices concatenated on the lane axis.
        cols = [hpad_ref[pad_max - pad_b + t * dil:
                         pad_max - pad_b + t * dil + S, :] for t in range(K)]
        if K % 2 == 1:                                    # center tap == residual input
            x_res = cols[(K - 1) // 2]
        else:
            x_res = hpad_ref[pad_max:pad_max + S, :]
        xcol = jnp.concatenate(cols, axis=-1).astype(jnp.bfloat16)       # (S, K*F)

        # Single MXU pass per block: (S, K*F) @ (K*F, 2F) -> (S, 2F), f32 accum.
        acc = jnp.dot(xcol, wc_ref[blk], preferred_element_type=jnp.float32)
        acc = acc + bc_ref[blk]

        gate = jax.nn.sigmoid(acc[:, F:])                 # gated linear unit
        hg = acc[:, :F] * gate

        # LayerNorm over feature axis (torch eps=1e-5, biased variance), f32.
        mean = jnp.mean(hg, axis=-1, keepdims=True)
        var = jnp.mean((hg - mean) ** 2, axis=-1, keepdims=True)
        hn = (hg - mean) * jax.lax.rsqrt(var + eps)
        hn = hn * gamma_ref[blk] + beta_ref[blk]

        # Residual with learned alpha, written back into the padded scratch center.
        hpad_ref[pad_max:pad_max + S, :] = x_res + alpha_ref[blk] * hn

    # ---- dense2 + sigmoid, emitted lane-dense as a (1, S) row ----
    hfin = hpad_ref[pad_max:pad_max + S, :]                              # (S, F) f32
    logits = jax.lax.dot_general(w2_ref[...], hfin, (((1,), (1,)), ((), ())),
                                 preferred_element_type=jnp.float32)    # (1, S)
    o_ref[0] = jax.nn.sigmoid(logits + b2_ref[0])


# ----------------------------- wrapper -------------------------------------- #

def selector2_forward(x, params, dilation_rates):
    # TODO(synk): the inline nn.Dropout(0.1) calls are stochastic (train-mode) in the
    # reference; treated here as identity (inference semantics).
    B, S, Din = x.shape
    F = params["w1"].shape[1]
    K = params["rgc"][0]["w"].shape[0]
    NB = len(dilation_rates)
    pad_max = max(dilation_rates) * (K - 1) // 2
    Sp = S + 2 * pad_max

    # One-time param packing / bf16 cast (glue; pre-pack outside the step in prod).
    w1 = params["w1"].astype(jnp.bfloat16)                              # (Din, F)
    wc = jnp.stack([p["w"].reshape(K * F, 2 * F)
                    for p in params["rgc"]]).astype(jnp.bfloat16)       # (NB, K*F, 2F)
    bc = jnp.stack([p["b"] for p in params["rgc"]])                     # (NB, 1, 2F)
    gamma = jnp.stack([p["gamma"] for p in params["rgc"]])              # (NB, 1, F)
    beta = jnp.stack([p["beta"] for p in params["rgc"]])                # (NB, 1, F)
    alpha = jnp.concatenate([p["alpha"].reshape(1)
                             for p in params["rgc"]])                   # (NB,)
    w2 = params["w2"].reshape(1, F)                                     # (1, F)
    b2 = params["b2"].reshape(1)                                        # (1,)

    kernel = functools.partial(_selector2_kernel, dilations=tuple(dilation_rates),
                               K=K, filters=F, pad_max=pad_max)

    out = pl.pallas_call(
        kernel,
        out_shape=jax.ShapeDtypeStruct((B, 1, S), jnp.float32),
        grid=(B,),
        in_specs=[
            pl.BlockSpec((1, S, Din), lambda b: (b, 0, 0)),             # x
            pl.BlockSpec((Din, F), lambda b: (0, 0)),                   # w1
            pl.BlockSpec((NB, K * F, 2 * F), lambda b: (0, 0, 0)),      # conv weights
            pl.BlockSpec((NB, 1, 2 * F), lambda b: (0, 0, 0)),          # conv biases
            pl.BlockSpec((NB, 1, F), lambda b: (0, 0, 0)),              # gamma
            pl.BlockSpec((NB, 1, F), lambda b: (0, 0, 0)),              # beta
            pl.BlockSpec(memory_space=pltpu.MemorySpace.SMEM),          # alpha
            pl.BlockSpec((1, F), lambda b: (0, 0)),                     # w2
            pl.BlockSpec(memory_space=pltpu.MemorySpace.SMEM),          # b2
        ],
        out_specs=pl.BlockSpec((1, 1, S), lambda b: (b, 0, 0)),
        scratch_shapes=[pltpu.VMEM((Sp, F), jnp.float32)],
        compiler_params=pltpu.CompilerParams(dimension_semantics=("parallel",)),
    )(x, w1, wc, bc, gamma, beta, alpha, w2, b2)

    # mask = sum(x >= 1e-5, axis=-1).bool(); depends only on the raw input -> wrapper.
    mask = jnp.any(x >= 1e-5, axis=-1)                                  # (B, S) bool
    return out.reshape(B, S, 1), mask


# ----------------------------- param init ---------------------------------- #

def init_params(key, input_size, filters, kernel_size, dilation_rates):
    n_blocks = len(dilation_rates)
    keys = jax.random.split(key, 2 * n_blocks + 3)
    params = {
        "w1": 0.1 * jax.random.normal(keys[0], (input_size, filters), jnp.float32),
        "w2": 0.1 * jax.random.normal(keys[1], (filters, 1), jnp.float32),
        "b2": 0.05 * jax.random.normal(keys[2], (1, 1), jnp.float32),
        "rgc": [],
    }
    for i in range(n_blocks):
        kw, kb = keys[3 + 2 * i], keys[4 + 2 * i]
        params["rgc"].append({
            # conv taps laid out as (K, F_in, 2F_out)  (== torch weight (2F, F, K) transposed)
            "w": 0.1 * jax.random.normal(kw, (kernel_size, filters, 2 * filters), jnp.float32),
            "b": 0.05 * jax.random.normal(kb, (1, 2 * filters), jnp.float32),
            "gamma": jnp.ones((1, filters), jnp.float32),   # LayerNorm weight init
            "beta": jnp.zeros((1, filters), jnp.float32),   # LayerNorm bias init
            # torch inits alpha to 0 (making the block a no-op); use a deterministic
            # nonzero value so the conv/gate/LN path is exercised.
            "alpha": jnp.full((1, 1), 0.5, jnp.float32),
        })
    return params


# ----------------------------- main ----------------------------------------- #

if __name__ == "__main__":
    B, S, INPUT_SIZE, FILTERS, KSIZE = 2, 16, 32, 32, 3
    DILATIONS = (1, 2, 4, 8, 1, 1)

    key = jax.random.PRNGKey(0)
    kx, kp = jax.random.split(key)
    x = jax.random.normal(kx, (B, S, INPUT_SIZE), jnp.float32)

    params = init_params(kp, INPUT_SIZE, FILTERS, KSIZE, DILATIONS)

    fwd = jax.jit(functools.partial(selector2_forward, dilation_rates=DILATIONS))
    out, mask = fwd(x, params)
    jax.block_until_ready((out, mask))
    assert out.shape == (B, S, 1) and mask.shape == (B, S)
    print("KERNEL_OK")
</pallas_src>

<mosaic_0001>
module attributes {stable_mosaic.version = 11 : i64} {
  func.func @_selector2_kernel(%arg0: i32, %arg1: memref<1x16x32xf32, #tpu.memory_space<vmem>>, %arg2: memref<32x32xbf16, #tpu.memory_space<vmem>>, %arg3: memref<6x96x64xbf16, #tpu.memory_space<vmem>>, %arg4: memref<6x1x64xf32, #tpu.memory_space<vmem>>, %arg5: memref<6x1x32xf32, #tpu.memory_space<vmem>>, %arg6: memref<6x1x32xf32, #tpu.memory_space<vmem>>, %arg7: memref<6xf32, #tpu.memory_space<smem>>, %arg8: memref<1x32xf32, #tpu.memory_space<vmem>>, %arg9: memref<1xf32, #tpu.memory_space<smem>>, %arg10: memref<1x1x16xf32, #tpu.memory_space<vmem>>, %arg11: memref<32x32xf32, #tpu.memory_space<vmem>>) attributes {dimension_semantics = [#tpu.dimension_semantics<parallel>], iteration_bounds = array<i64: 2>, scalar_prefetch = 0 : i64, scratch_operands = 1 : i64, tpu.core_type = #tpu.core_type<tc>, window_params = [{transform_indices = @transform_0, window_bounds = array<i64: 1, 16, 32>}, {pipeline_mode = #tpu.pipeline_mode<synchronous>, transform_indices = @transform_1, window_bounds = array<i64: 32, 32>}, {pipeline_mode = #tpu.pipeline_mode<synchronous>, transform_indices = @transform_2, window_bounds = array<i64: 6, 96, 64>}, {pipeline_mode = #tpu.pipeline_mode<synchronous>, transform_indices = @transform_3, window_bounds = array<i64: 6, 1, 64>}, {pipeline_mode = #tpu.pipeline_mode<synchronous>, transform_indices = @transform_4, window_bounds = array<i64: 6, 1, 32>}, {pipeline_mode = #tpu.pipeline_mode<synchronous>, transform_indices = @transform_5, window_bounds = array<i64: 6, 1, 32>}, {transform_indices = @transform_6, window_bounds = array<i64: 6>}, {pipeline_mode = #tpu.pipeline_mode<synchronous>, transform_indices = @transform_7, window_bounds = array<i64: 1, 32>}, {transform_indices = @transform_8, window_bounds = array<i64: 1>}, {transform_indices = @transform_9, window_bounds = array<i64: 1, 1, 16>}]} {
    %c0 = arith.constant 0 : index
    %c0_0 = arith.constant 0 : index
    %c0_1 = arith.constant 0 : index
    %0 = vector.load %arg1[%c0, %c0_0, %c0_1] : memref<1x16x32xf32, #tpu.memory_space<vmem>>, vector<1x16x32xf32>
    %1 = vector.shape_cast %0 : vector<1x16x32xf32> to vector<16x32xf32>
    %2 = arith.truncf %1 : vector<16x32xf32> to vector<16x32xbf16>
    %c0_2 = arith.constant 0 : index
    %c0_3 = arith.constant 0 : index
    %3 = vector.load %arg2[%c0_2, %c0_3] : memref<32x32xbf16, #tpu.memory_space<vmem>>, vector<32x32xbf16>
    %cst = arith.constant dense<0.000000e+00> : vector<16x32xf32>
    %4 = tpu.matmul %2, %3, %cst {dimension_numbers = #tpu.dot_dimension_numbers<[1], [0], [0], [1], [0, 0, 1, 1], [], []>} : vector<16x32xbf16>, vector<32x32xbf16>, vector<16x32xf32> -> vector<16x32xf32>
    %cst_4 = arith.constant 0.000000e+00 : f32
    %5 = vector.broadcast %cst_4 : f32 to vector<32x32xf32>
    %c0_5 = arith.constant 0 : index
    %c0_6 = arith.constant 0 : index
    %6 = vector.load %arg11[%c0_5, %c0_6] : memref<32x32xf32, #tpu.memory_space<vmem>>, vector<32x32xf32>
    tpu.vector_store %arg11[%c0_5, %c0_6], %5 {strides = array<i32>} : memref<32x32xf32, #tpu.memory_space<vmem>>, vector<32x32xf32>,
    %c8 = arith.constant 8 : index
    %c0_7 = arith.constant 0 : index
    %7 = vector.load %arg11[%c8, %c0_7] : memref<32x32xf32, #tpu.memory_space<vmem>>, vector<16x32xf32>
    tpu.vector_store %arg11[%c8, %c0_7], %4 {strides = array<i32>} : memref<32x32xf32, #tpu.memory_space<vmem>>, vector<16x32xf32>,
    %c7 = arith.constant 7 : index
    %c0_8 = arith.constant 0 : index
    %8 = vector.load %arg11[%c7, %c0_8] : memref<32x32xf32, #tpu.memory_space<vmem>>, vector<16x32xf32>
    %c8_9 = arith.constant 8 : index
    %c0_10 = arith.constant 0 : index
    %9 = vector.load %arg11[%c8_9, %c0_10] : memref<32x32xf32, #tpu.memory_space<vmem>>, vector<16x32xf32>
    %c9 = arith.constant 9 : index
    %c0_11 = arith.constant 0 : index
    %10 = vector.load %arg11[%c9, %c0_11] : memref<32x32xf32, #tpu.memory_space<vmem>>, vector<16x32xf32>
    %11 = tpu.concatenate %8, %9, %10 in 1 : vector<16x32xf32>, vector<16x32xf32>, vector<16x32xf32> -> vector<16x96xf32>
    %12 = arith.truncf %11 : vector<16x96xf32> to vector<16x96xbf16>
    %c0_12 = arith.constant 0 : index
    %c0_13 = arith.constant 0 : index
    %c0_14 = arith.constant 0 : index
    %13 = vector.load %arg3[%c0_12, %c0_13, %c0_14] : memref<6x96x64xbf16, #tpu.memory_space<vmem>>, vector<1x96x64xbf16>
    %14 = vector.shape_cast %13 : vector<1x96x64xbf16> to vector<96x64xbf16>
    %cst_15 = arith.constant dense<0.000000e+00> : vector<16x64xf32>
    %15 = tpu.matmul %12, %14, %cst_15 {dimension_numbers = #tpu.dot_dimension_numbers<[1], [0], [0], [1], [0, 0, 1, 1], [], []>} : vector<16x96xbf16>, vector<96x64xbf16>, vector<16x64xf32> -> vector<16x64xf32>
    %c0_16 = arith.constant 0 : index
    %c0_17 = arith.constant 0 : index
    %c0_18 = arith.constant 0 : index
    %16 = vector.load %arg4[%c0_16, %c0_17, %c0_18] : memref<6x1x64xf32, #tpu.memory_space<vmem>>, vector<1x1x64xf32>
    %17 = vector.shape_cast %16 : vector<1x1x64xf32> to vector<1x64xf32>
    %18 = vector.broadcast %17 : vector<1x64xf32> to vector<16x64xf32>
    %19 = arith.addf %15, %18 : vector<16x64xf32>
    %20 = vector.extract_strided_slice %19 {offsets = [0, 32], sizes = [16, 32], strides = [1, 1]} : vector<16x64xf32> to vector<16x32xf32>
    %21 = arith.negf %20 : vector<16x32xf32>
    %22 = math.exp %21 : vector<16x32xf32>
    %cst_19 = arith.constant 1.000000e+00 : f32
    %23 = vector.broadcast %cst_19 : f32 to vector<16x32xf32>
    %24 = arith.addf %23, %22 : vector<16x32xf32>
    %25 = arith.divf %23, %24 : vector<16x32xf32>
    %26 = vector.extract_strided_slice %19 {offsets = [0, 0], sizes = [16, 32], strides = [1, 1]} : vector<16x64xf32> to vector<16x32xf32>
    %27 = arith.mulf %26, %25 : vector<16x32xf32>
    %cst_20 = arith.constant dense<0.000000e+00> : vector<16xf32>
    %28 = vector.multi_reduction <add>, %27, %cst_20 [1] : vector<16x32xf32> to vector<16xf32>
    %29 = vector.shape_cast %28 : vector<16xf32> to vector<16x1xf32>
    %cst_21 = arith.constant 3.200000e+01 : f32
    %30 = vector.broadcast %cst_21 : f32 to vector<16x1xf32>
    %31 = arith.divf %29, %30 : vector<16x1xf32>
    %32 = vector.broadcast %31 : vector<16x1xf32> to vector<16x32xf32>
    %33 = arith.subf %27, %32 : vector<16x32xf32>
    %34 = arith.mulf %33, %33 : vector<16x32xf32>
    %cst_22 = arith.constant dense<0.000000e+00> : vector<16xf32>
    %35 = vector.multi_reduction <add>, %34, %cst_22 [1] : vector<16x32xf32> to vector<16xf32>
    %36 = vector.shape_cast %35 : vector<16xf32> to vector<16x1xf32>
    %cst_23 = arith.constant 3.200000e+01 : f32
    %37 = vector.broadcast %cst_23 : f32 to vector<16x1xf32>
    %38 = arith.divf %36, %37 : vector<16x1xf32>
    %39 = vector.broadcast %31 : vector<16x1xf32> to vector<16x32xf32>
    %40 = arith.subf %27, %39 : vector<16x32xf32>
    %cst_24 = arith.constant 9.99999974E-6 : f32
    %41 = vector.broadcast %cst_24 : f32 to vector<16x1xf32>
    %42 = arith.addf %38, %41 : vector<16x1xf32>
    %43 = math.rsqrt %42 : vector<16x1xf32>
    %44 = vector.broadcast %43 : vector<16x1xf32> to vector<16x32xf32>
    %45 = arith.mulf %40, %44 : vector<16x32xf32>
    %c0_25 = arith.constant 0 : index
    %c0_26 = arith.constant 0 : index
    %c0_27 = arith.constant 0 : index
    %46 = vector.load %arg5[%c0_25, %c0_26, %c0_27] : memref<6x1x32xf32, #tpu.memory_space<vmem>>, vector<1x1x32xf32>
    %47 = vector.shape_cast %46 : vector<1x1x32xf32> to vector<1x32xf32>
    %48 = vector.broadcast %47 : vector<1x32xf32> to vector<16x32xf32>
    %49 = arith.mulf %45, %48 : vector<16x32xf32>
    %c0_28 = arith.constant 0 : index
    %c0_29 = arith.constant 0 : index
    %c0_30 = arith.constant 0 : index
    %50 = vector.load %arg6[%c0_28, %c0_29, %c0_30] : memref<6x1x32xf32, #tpu.memory_space<vmem>>, vector<1x1x32xf32>
    %51 = vector.shape_cast %50 : vector<1x1x32xf32> to vector<1x32xf32>
    %52 = vector.broadcast %51 : vector<1x32xf32> to vector<16x32xf32>
    %53 = arith.addf %49, %52 : vector<16x32xf32>
    %c0_31 = arith.constant 0 : index
    %54 = memref.load %arg7[%c0_31] : memref<6xf32, #tpu.memory_space<smem>>
    %55 = vector.broadcast %54 : f32 to vector<16x32xf32>
    %56 = arith.mulf %55, %53 : vector<16x32xf32>
    %57 = arith.addf %9, %56 : vector<16x32xf32>
    %c8_32 = arith.constant 8 : index
    %c0_33 = arith.constant 0 : index
    %58 = vector.load %arg11[%c8_32, %c0_33] : memref<32x32xf32, #tpu.memory_space<vmem>>, vector<16x32xf32>
    tpu.vector_store %arg11[%c8_32, %c0_33], %57 {strides = array<i32>} : memref<32x32xf32, #tpu.memory_space<vmem>>, vector<16x32xf32>,
    %c6 = arith.constant 6 : index
    %c0_34 = arith.constant 0 : index
    %59 = vector.load %arg11[%c6, %c0_34] : memref<32x32xf32, #tpu.memory_space<vmem>>, vector<16x32xf32>
    %c8_35 = arith.constant 8 : index
    %c0_36 = arith.constant 0 : index
    %60 = vector.load %arg11[%c8_35, %c0_36] : memref<32x32xf32, #tpu.memory_space<vmem>>, vector<16x32xf32>
    %c10 = arith.constant 10 : index
    %c0_37 = arith.constant 0 : index
    %61 = vector.load %arg11[%c10, %c0_37] : memref<32x32xf32, #tpu.memory_space<vmem>>, vector<16x32xf32>
    %62 = tpu.concatenate %59, %60, %61 in 1 : vector<16x32xf32>, vector<16x32xf32>, vector<16x32xf32> -> vector<16x96xf32>
    %63 = arith.truncf %62 : vector<16x96xf32> to vector<16x96xbf16>
    %c1 = arith.constant 1 : index
    %c0_38 = arith.constant 0 : index
    %c0_39 = arith.constant 0 : index
    %64 = vector.load %arg3[%c1, %c0_38, %c0_39] : memref<6x96x64xbf16, #tpu.memory_space<vmem>>, vector<1x96x64xbf16>
    %65 = vector.shape_cast %64 : vector<1x96x64xbf16> to vector<96x64xbf16>
    %cst_40 = arith.constant dense<0.000000e+00> : vector<16x64xf32>
    %66 = tpu.matmul %63, %65, %cst_40 {dimension_numbers = #tpu.dot_dimension_numbers<[1], [0], [0], [1], [0, 0, 1, 1], [], []>} : vector<16x96xbf16>, vector<96x64xbf16>, vector<16x64xf32> -> vector<16x64xf32>
    %c1_41 = arith.constant 1 : index
    %c0_42 = arith.constant 0 : index
    %c0_43 = arith.constant 0 : index
    %67 = vector.load %arg4[%c1_41, %c0_42, %c0_43] : memref<6x1x64xf32, #tpu.memory_space<vmem>>, vector<1x1x64xf32>
    %68 = vector.shape_cast %67 : vector<1x1x64xf32> to vector<1x64xf32>
    %69 = vector.broadcast %68 : vector<1x64xf32> to vector<16x64xf32>
    %70 = arith.addf %66, %69 : vector<16x64xf32>
    %71 = vector.extract_strided_slice %70 {offsets = [0, 32], sizes = [16, 32], strides = [1, 1]} : vector<16x64xf32> to vector<16x32xf32>
    %72 = arith.negf %71 : vector<16x32xf32>
    %73 = math.exp %72 : vector<16x32xf32>
    %cst_44 = arith.constant 1.000000e+00 : f32
    %74 = vector.broadcast %cst_44 : f32 to vector<16x32xf32>
    %75 = arith.addf %74, %73 : vector<16x32xf32>
    %76 = arith.divf %74, %75 : vector<16x32xf32>
    %77 = vector.extract_strided_slice %70 {offsets = [0, 0], sizes = [16, 32], strides = [1, 1]} : vector<16x64xf32> to vector<16x32xf32>
    %78 = arith.mulf %77, %76 : vector<16x32xf32>
    %cst_45 = arith.constant dense<0.000000e+00> : vector<16xf32>
    %79 = vector.multi_reduction <add>, %78, %cst_45 [1] : vector<16x32xf32> to vector<16xf32>
    %80 = vector.shape_cast %79 : vector<16xf32> to vector<16x1xf32>
    %cst_46 = arith.constant 3.200000e+01 : f32
    %81 = vector.broadcast %cst_46 : f32 to vector<16x1xf32>
    %82 = arith.divf %80, %81 : vector<16x1xf32>
    %83 = vector.broadcast %82 : vector<16x1xf32> to vector<16x32xf32>
    %84 = arith.subf %78, %83 : vector<16x32xf32>
    %85 = arith.mulf %84, %84 : vector<16x32xf32>
    %cst_47 = arith.constant dense<0.000000e+00> : vector<16xf32>
    %86 = vector.multi_reduction <add>, %85, %cst_47 [1] : vector<16x32xf32> to vector<16xf32>
    %87 = vector.shape_cast %86 : vector<16xf32> to vector<16x1xf32>
    %cst_48 = arith.constant 3.200000e+01 : f32
    %88 = vector.broadcast %cst_48 : f32 to vector<16x1xf32>
    %89 = arith.divf %87, %88 : vector<16x1xf32>
    %90 = vector.broadcast %82 : vector<16x1xf32> to vector<16x32xf32>
    %91 = arith.subf %78, %90 : vector<16x32xf32>
    %cst_49 = arith.constant 9.99999974E-6 : f32
    %92 = vector.broadcast %cst_49 : f32 to vector<16x1xf32>
    %93 = arith.addf %89, %92 : vector<16x1xf32>
    %94 = math.rsqrt %93 : vector<16x1xf32>
    %95 = vector.broadcast %94 : vector<16x1xf32> to vector<16x32xf32>
    %96 = arith.mulf %91, %95 : vector<16x32xf32>
    %c1_50 = arith.constant 1 : index
    %c0_51 = arith.constant 0 : index
    %c0_52 = arith.constant 0 : index
    %97 = vector.load %arg5[%c1_50, %c0_51, %c0_52] : memref<6x1x32xf32, #tpu.memory_space<vmem>>, vector<1x1x32xf32>
    %98 = vector.shape_cast %97 : vector<1x1x32xf32> to vector<1x32xf32>
    %99 = vector.broadcast %98 : vector<1x32xf32> to vector<16x32xf32>
    %100 = arith.mulf %96, %99 : vector<16x32xf32>
    %c1_53 = arith.constant 1 : index
    %c0_54 = arith.constant 0 : index
    %c0_55 = arith.constant 0 : index
    %101 = vector.load %arg6[%c1_53, %c0_54, %c0_55] : memref<6x1x32xf32, #tpu.memory_space<vmem>>, vector<1x1x32xf32>
    %102 = vector.shape_cast %101 : vector<1x1x32xf32> to vector<1x32xf32>
    %103 = vector.broadcast %102 : vector<1x32xf32> to vector<16x32xf32>
    %104 = arith.addf %100, %103 : vector<16x32xf32>
    %c1_56 = arith.constant 1 : index
    %105 = memref.load %arg7[%c1_56] : memref<6xf32, #tpu.memory_space<smem>>
    %106 = vector.broadcast %105 : f32 to vector<16x32xf32>
    %107 = arith.mulf %106, %104 : vector<16x32xf32>
    %108 = arith.addf %60, %107 : vector<16x32xf32>
    %c8_57 = arith.constant 8 : index
    %c0_58 = arith.constant 0 : index
    %109 = vector.load %arg11[%c8_57, %c0_58] : memref<32x32xf32, #tpu.memory_space<vmem>>, vector<16x32xf32>
    tpu.vector_store %arg11[%c8_57, %c0_58], %108 {strides = array<i32>} : memref<32x32xf32, #tpu.memory_space<vmem>>, vector<16x32xf32>,
    %c4 = arith.constant 4 : index
    %c0_59 = arith.constant 0 : index
    %110 = vector.load %arg11[%c4, %c0_59] : memref<32x32xf32, #tpu.memory_space<vmem>>, vector<16x32xf32>
    %c8_60 = arith.constant 8 : index
    %c0_61 = arith.constant 0 : index
    %111 = vector.load %arg11[%c8_60, %c0_61] : memref<32x32xf32, #tpu.memory_space<vmem>>, vector<16x32xf32>
    %c12 = arith.constant 12 : index
    %c0_62 = arith.constant 0 : index
    %112 = vector.load %arg11[%c12, %c0_62] : memref<32x32xf32, #tpu.memory_space<vmem>>, vector<16x32xf32>
    %113 = tpu.concatenate %110, %111, %112 in 1 : vector<16x32xf32>, vector<16x32xf32>, vector<16x32xf32> -> vector<16x96xf32>
    %114 = arith.truncf %113 : vector<16x96xf32> to vector<16x96xbf16>
    %c2 = arith.constant 2 : index
    %c0_63 = arith.constant 0 : index
    %c0_64 = arith.constant 0 : index
    %115 = vector.load %arg3[%c2, %c0_63, %c0_64] : memref<6x96x64xbf16, #tpu.memory_space<vmem>>, vector<1x96x64xbf16>
    %116 = vector.shape_cast %115 : vector<1x96x64xbf16> to vector<96x64xbf16>
    %cst_65 = arith.constant dense<0.000000e+00> : vector<16x64xf32>
    %117 = tpu.matmul %114, %116, %cst_65 {dimension_numbers = #tpu.dot_dimension_numbers<[1], [0], [0], [1], [0, 0, 1, 1], [], []>} : vector<16x96xbf16>, vector<96x64xbf16>, vector<16x64xf32> -> vector<16x64xf32>
    %c2_66 = arith.constant 2 : index
    %c0_67 = arith.constant 0 : index
    %c0_68 = arith.constant 0 : index
    %118 = vector.load %arg4[%c2_66, %c0_67, %c0_68] : memref<6x1x64xf32, #tpu.memory_space<vmem>>, vector<1x1x64xf32>
    %119 = vector.shape_cast %118 : vector<1x1x64xf32> to vector<1x64xf32>
    %120 = vector.broadcast %119 : vector<1x64xf32> to vector<16x64xf32>
    %121 = arith.addf %117, %120 : vector<16x64xf32>
    %122 = vector.extract_strided_slice %121 {offsets = [0, 32], sizes = [16, 32], strides = [1, 1]} : vector<16x64xf32> to vector<16x32xf32>
    %123 = arith.negf %122 : vector<16x32xf32>
    %124 = math.exp %123 : vector<16x32xf32>
    %cst_69 = arith.constant 1.000000e+00 : f32
    %125 = vector.broadcast %cst_69 : f32 to vector<16x32xf32>
    %126 = arith.addf %125, %124 : vector<16x32xf32>
    %127 = arith.divf %125, %126 : vector<16x32xf32>
    %128 = vector.extract_strided_slice %121 {offsets = [0, 0], sizes = [16, 32], strides = [1, 1]} : vector<16x64xf32> to vector<16x32xf32>
    %129 = arith.mulf %128, %127 : vector<16x32xf32>
    %cst_70 = arith.constant dense<0.000000e+00> : vector<16xf32>
    %130 = vector.multi_reduction <add>, %129, %cst_70 [1] : vector<16x32xf32> to vector<16xf32>
    %131 = vector.shape_cast %130 : vector<16xf32> to vector<16x1xf32>
    %cst_71 = arith.constant 3.200000e+01 : f32
    %132 = vector.broadcast %cst_71 : f32 to vector<16x1xf32>
    %133 = arith.divf %131, %132 : vector<16x1xf32>
    %134 = vector.broadcast %133 : vector<16x1xf32> to vector<16x32xf32>
    %135 = arith.subf %129, %134 : vector<16x32xf32>
    %136 = arith.mulf %135, %135 : vector<16x32xf32>
    %cst_72 = arith.constant dense<0.000000e+00> : vector<16xf32>
    %137 = vector.multi_reduction <add>, %136, %cst_72 [1] : vector<16x32xf32> to vector<16xf32>
    %138 = vector.shape_cast %137 : vector<16xf32> to vector<16x1xf32>
    %cst_73 = arith.constant 3.200000e+01 : f32
    %139 = vector.broadcast %cst_73 : f32 to vector<16x1xf32>
    %140 = arith.divf %138, %139 : vector<16x1xf32>
    %141 = vector.broadcast %133 : vector<16x1xf32> to vector<16x32xf32>
    %142 = arith.subf %129, %141 : vector<16x32xf32>
    %cst_74 = arith.constant 9.99999974E-6 : f32
    %143 = vector.broadcast %cst_74 : f32 to vector<16x1xf32>
    %144 = arith.addf %140, %143 : vector<16x1xf32>
    %145 = math.rsqrt %144 : vector<16x1xf32>
    %146 = vector.broadcast %145 : vector<16x1xf32> to vector<16x32xf32>
    %147 = arith.mulf %142, %146 : vector<16x32xf32>
    %c2_75 = arith.constant 2 : index
    %c0_76 = arith.constant 0 : index
    %c0_77 = arith.constant 0 : index
    %148 = vector.load %arg5[%c2_75, %c0_76, %c0_77] : memref<6x1x32xf32, #tpu.memory_space<vmem>>, vector<1x1x32xf32>
    %149 = vector.shape_cast %148 : vector<1x1x32xf32> to vector<1x32xf32>
    %150 = vector.broadcast %149 : vector<1x32xf32> to vector<16x32xf32>
    %151 = arith.mulf %147, %150 : vector<16x32xf32>
    %c2_78 = arith.constant 2 : index
    %c0_79 = arith.constant 0 : index
    %c0_80 = arith.constant 0 : index
    %152 = vector.load %arg6[%c2_78, %c0_79, %c0_80] : memref<6x1x32xf32, #tpu.memory_space<vmem>>, vector<1x1x32xf32>
    %153 = vector.shape_cast %152 : vector<1x1x32xf32> to vector<1x32xf32>
    %154 = vector.broadcast %153 : vector<1x32xf32> to vector<16x32xf32>
    %155 = arith.addf %151, %154 : vector<16x32xf32>
    %c2_81 = arith.constant 2 : index
    %156 = memref.load %arg7[%c2_81] : memref<6xf32, #tpu.memory_space<smem>>
    %157 = vector.broadcast %156 : f32 to vector<16x32xf32>
    %158 = arith.mulf %157, %155 : vector<16x32xf32>
    %159 = arith.addf %111, %158 : vector<16x32xf32>
    %c8_82 = arith.constant 8 : index
    %c0_83 = arith.constant 0 : index
    %160 = vector.load %arg11[%c8_82, %c0_83] : memref<32x32xf32, #tpu.memory_space<vmem>>, vector<16x32xf32>
    tpu.vector_store %arg11[%c8_82, %c0_83], %159 {strides = array<i32>} : memref<32x32xf32, #tpu.memory_space<vmem>>, vector<16x32xf32>,
    %c0_84 = arith.constant 0 : index
    %c0_85 = arith.constant 0 : index
    %161 = vector.load %arg11[%c0_84, %c0_85] : memref<32x32xf32, #tpu.memory_space<vmem>>, vector<16x32xf32>
    %c8_86 = arith.constant 8 : index
    %c0_87 = arith.constant 0 : index
    %162 = vector.load %arg11[%c8_86, %c0_87] : memref<32x32xf32, #tpu.memory_space<vmem>>, vector<16x32xf32>
    %c16 = arith.constant 16 : index
    %c0_88 = arith.constant 0 : index
    %163 = vector.load %arg11[%c16, %c0_88] : memref<32x32xf32, #tpu.memory_space<vmem>>, vector<16x32xf32>
    %164 = tpu.concatenate %161, %162, %163 in 1 : vector<16x32xf32>, vector<16x32xf32>, vector<16x32xf32> -> vector<16x96xf32>
    %165 = arith.truncf %164 : vector<16x96xf32> to vector<16x96xbf16>
    %c3 = arith.constant 3 : index
    %c0_89 = arith.constant 0 : index
    %c0_90 = arith.constant 0 : index
    %166 = vector.load %arg3[%c3, %c0_89, %c0_90] : memref<6x96x64xbf16, #tpu.memory_space<vmem>>, vector<1x96x64xbf16>
    %167 = vector.shape_cast %166 : vector<1x96x64xbf16> to vector<96x64xbf16>
    %cst_91 = arith.constant dense<0.000000e+00> : vector<16x64xf32>
    %168 = tpu.matmul %165, %167, %cst_91 {dimension_numbers = #tpu.dot_dimension_numbers<[1], [0], [0], [1], [0, 0, 1, 1], [], []>} : vector<16x96xbf16>, vector<96x64xbf16>, vector<16x64xf32> -> vector<16x64xf32>
    %c3_92 = arith.constant 3 : index
    %c0_93 = arith.constant 0 : index
    %c0_94 = arith.constant 0 : index
    %169 = vector.load %arg4[%c3_92, %c0_93, %c0_94] : memref<6x1x64xf32, #tpu.memory_space<vmem>>, vector<1x1x64xf32>
    %170 = vector.shape_cast %169 : vector<1x1x64xf32> to vector<1x64xf32>
    %171 = vector.broadcast %170 : vector<1x64xf32> to vector<16x64xf32>
    %172 = arith.addf %168, %171 : vector<16x64xf32>
    %173 = vector.extract_strided_slice %172 {offsets = [0, 32], sizes = [16, 32], strides = [1, 1]} : vector<16x64xf32> to vector<16x32xf32>
    %174 = arith.negf %173 : vector<16x32xf32>
    %175 = math.exp %174 : vector<16x32xf32>
    %cst_95 = arith.constant 1.000000e+00 : f32
    %176 = vector.broadcast %cst_95 : f32 to vector<16x32xf32>
    %177 = arith.addf %176, %175 : vector<16x32xf32>
    %178 = arith.divf %176, %177 : vector<16x32xf32>
    %179 = vector.extract_strided_slice %172 {offsets = [0, 0], sizes = [16, 32], strides = [1, 1]} : vector<16x64xf32> to vector<16x32xf32>
    %180 = arith.mulf %179, %178 : vector<16x32xf32>
    %cst_96 = arith.constant dense<0.000000e+00> : vector<16xf32>
    %181 = vector.multi_reduction <add>, %180, %cst_96 [1] : vector<16x32xf32> to vector<16xf32>
    %182 = vector.shape_cast %181 : vector<16xf32> to vector<16x1xf32>
    %cst_97 = arith.constant 3.200000e+01 : f32
    %183 = vector.broadcast %cst_97 : f32 to vector<16x1xf32>
    %184 = arith.divf %182, %183 : vector<16x1xf32>
    %185 = vector.broadcast %184 : vector<16x1xf32> to vector<16x32xf32>
    %186 = arith.subf %180, %185 : vector<16x32xf32>
    %187 = arith.mulf %186, %186 : vector<16x32xf32>
    %cst_98 = arith.constant dense<0.000000e+00> : vector<16xf32>
    %188 = vector.multi_reduction <add>, %187, %cst_98 [1] : vector<16x32xf32> to vector<16xf32>
    %189 = vector.shape_cast %188 : vector<16xf32> to vector<16x1xf32>
    %cst_99 = arith.constant 3.200000e+01 : f32
    %190 = vector.broadcast %cst_99 : f32 to vector<16x1xf32>
    %191 = arith.divf %189, %190 : vector<16x1xf32>
    %192 = vector.broadcast %184 : vector<16x1xf32> to vector<16x32xf32>
    %193 = arith.subf %180, %192 : vector<16x32xf32>
    %cst_100 = arith.constant 9.99999974E-6 : f32
    %194 = vector.broadcast %cst_100 : f32 to vector<16x1xf32>
    %195 = arith.addf %191, %194 : vector<16x1xf32>
    %196 = math.rsqrt %195 : vector<16x1xf32>
    %197 = vector.broadcast %196 : vector<16x1xf32> to vector<16x32xf32>
    %198 = arith.mulf %193, %197 : vector<16x32xf32>
    %c3_101 = arith.constant 3 : index
    %c0_102 = arith.constant 0 : index
    %c0_103 = arith.constant 0 : index
    %199 = vector.load %arg5[%c3_101, %c0_102, %c0_103] : memref<6x1x32xf32, #tpu.memory_space<vmem>>, vector<1x1x32xf32>
    %200 = vector.shape_cast %199 : vector<1x1x32xf32> to vector<1x32xf32>
    %201 = vector.broadcast %200 : vector<1x32xf32> to vector<16x32xf32>
    %202 = arith.mulf %198, %201 : vector<16x32xf32>
    %c3_104 = arith.constant 3 : index
    %c0_105 = arith.constant 0 : index
    %c0_106 = arith.constant 0 : index
    %203 = vector.load %arg6[%c3_104, %c0_105, %c0_106] : memref<6x1x32xf32, #tpu.memory_space<vmem>>, vector<1x1x32xf32>
    %204 = vector.shape_cast %203 : vector<1x1x32xf32> to vector<1x32xf32>
    %205 = vector.broadcast %204 : vector<1x32xf32> to vector<16x32xf32>
    %206 = arith.addf %202, %205 : vector<16x32xf32>
    %c3_107 = arith.constant 3 : index
    %207 = memref.load %arg7[%c3_107] : memref<6xf32, #tpu.memory_space<smem>>
    %208 = vector.broadcast %207 : f32 to vector<16x32xf32>
    %209 = arith.mulf %208, %206 : vector<16x32xf32>
    %210 = arith.addf %162, %209 : vector<16x32xf32>
    %c8_108 = arith.constant 8 : index
    %c0_109 = arith.constant 0 : index
    %211 = vector.load %arg11[%c8_108, %c0_109] : memref<32x32xf32, #tpu.memory_space<vmem>>, vector<16x32xf32>
    tpu.vector_store %arg11[%c8_108, %c0_109], %210 {strides = array<i32>} : memref<32x32xf32, #tpu.memory_space<vmem>>, vector<16x32xf32>,
    %c7_110 = arith.constant 7 : index
    %c0_111 = arith.constant 0 : index
    %212 = vector.load %arg11[%c7_110, %c0_111] : memref<32x32xf32, #tpu.memory_space<vmem>>, vector<16x32xf32>
    %c8_112 = arith.constant 8 : index
    %c0_113 = arith.constant 0 : index
    %213 = vector.load %arg11[%c8_112, %c0_113] : memref<32x32xf32, #tpu.memory_space<vmem>>, vector<16x32xf32>
    %c9_114 = arith.constant 9 : index
    %c0_115 = arith.constant 0 : index
    %214 = vector.load %arg11[%c9_114, %c0_115] : memref<32x32xf32, #tpu.memory_space<vmem>>, vector<16x32xf32>
    %215 = tpu.concatenate %212, %213, %214 in 1 : vector<16x32xf32>, vector<16x32xf32>, vector<16x32xf32> -> vector<16x96xf32>
    %216 = arith.truncf %215 : vector<16x96xf32> to vector<16x96xbf16>
    %c4_116 = arith.constant 4 : index
    %c0_117 = arith.constant 0 : index
    %c0_118 = arith.constant 0 : index
    %217 = vector.load %arg3[%c4_116, %c0_117, %c0_118] : memref<6x96x64xbf16, #tpu.memory_space<vmem>>, vector<1x96x64xbf16>
    %218 = vector.shape_cast %217 : vector<1x96x64xbf16> to vector<96x64xbf16>
    %cst_119 = arith.constant dense<0.000000e+00> : vector<16x64xf32>
    %219 = tpu.matmul %216, %218, %cst_119 {dimension_numbers = #tpu.dot_dimension_numbers<[1], [0], [0], [1], [0, 0, 1, 1], [], []>} : vector<16x96xbf16>, vector<96x64xbf16>, vector<16x64xf32> -> vector<16x64xf32>
    %c4_120 = arith.constant 4 : index
    %c0_121 = arith.constant 0 : index
    %c0_122 = arith.constant 0 : index
    %220 = vector.load %arg4[%c4_120, %c0_121, %c0_122] : memref<6x1x64xf32, #tpu.memory_space<vmem>>, vector<1x1x64xf32>
    %221 = vector.shape_cast %220 : vector<1x1x64xf32> to vector<1x64xf32>
    %222 = vector.broadcast %221 : vector<1x64xf32> to vector<16x64xf32>
    %223 = arith.addf %219, %222 : vector<16x64xf32>
    %224 = vector.extract_strided_slice %223 {offsets = [0, 32], sizes = [16, 32], strides = [1, 1]} : vector<16x64xf32> to vector<16x32xf32>
    %225 = arith.negf %224 : vector<16x32xf32>
    %226 = math.exp %225 : vector<16x32xf32>
    %cst_123 = arith.constant 1.000000e+00 : f32
    %227 = vector.broadcast %cst_123 : f32 to vector<16x32xf32>
    %228 = arith.addf %227, %226 : vector<16x32xf32>
    %229 = arith.divf %227, %228 : vector<16x32xf32>
    %230 = vector.extract_strided_slice %223 {offsets = [0, 0], sizes = [16, 32], strides = [1, 1]} : vector<16x64xf32> to vector<16x32xf32>
    %231 = arith.mulf %230, %229 : vector<16x32xf32>
    %cst_124 = arith.constant dense<0.000000e+00> : vector<16xf32>
    %232 = vector.multi_reduction <add>, %231, %cst_124 [1] : vector<16x32xf32> to vector<16xf32>
    %233 = vector.shape_cast %232 : vector<16xf32> to vector<16x1xf32>
    %cst_125 = arith.constant 3.200000e+01 : f32
    %234 = vector.broadcast %cst_125 : f32 to vector<16x1xf32>
    %235 = arith.divf %233, %234 : vector<16x1xf32>
    %236 = vector.broadcast %235 : vector<16x1xf32> to vector<16x32xf32>
    %237 = arith.subf %231, %236 : vector<16x32xf32>
    %238 = arith.mulf %237, %237 : vector<16x32xf32>
    %cst_126 = arith.constant dense<0.000000e+00> : vector<16xf32>
    %239 = vector.multi_reduction <add>, %238, %cst_126 [1] : vector<16x32xf32> to vector<16xf32>
    %240 = vector.shape_cast %239 : vector<16xf32> to vector<16x1xf32>
    %cst_127 = arith.constant 3.200000e+01 : f32
    %241 = vector.broadcast %cst_127 : f32 to vector<16x1xf32>
    %242 = arith.divf %240, %241 : vector<16x1xf32>
    %243 = vector.broadcast %235 : vector<16x1xf32> to vector<16x32xf32>
    %244 = arith.subf %231, %243 : vector<16x32xf32>
    %cst_128 = arith.constant 9.99999974E-6 : f32
    %245 = vector.broadcast %cst_128 : f32 to vector<16x1xf32>
    %246 = arith.addf %242, %245 : vector<16x1xf32>
    %247 = math.rsqrt %246 : vector<16x1xf32>
    %248 = vector.broadcast %247 : vector<16x1xf32> to vector<16x32xf32>
    %249 = arith.mulf %244, %248 : vector<16x32xf32>
    %c4_129 = arith.constant 4 : index
    %c0_130 = arith.constant 0 : index
    %c0_131 = arith.constant 0 : index
    %250 = vector.load %arg5[%c4_129, %c0_130, %c0_131] : memref<6x1x32xf32, #tpu.memory_space<vmem>>, vector<1x1x32xf32>
    %251 = vector.shape_cast %250 : vector<1x1x32xf32> to vector<1x32xf32>
    %252 = vector.broadcast %251 : vector<1x32xf32> to vector<16x32xf32>
    %253 = arith.mulf %249, %252 : vector<16x32xf32>
    %c4_132 = arith.constant 4 : index
    %c0_133 = arith.constant 0 : index
    %c0_134 = arith.constant 0 : index
    %254 = vector.load %arg6[%c4_132, %c0_133, %c0_134] : memref<6x1x32xf32, #tpu.memory_space<vmem>>, vector<1x1x32xf32>
    %255 = vector.shape_cast %254 : vector<1x1x32xf32> to vector<1x32xf32>
    %256 = vector.broadcast %255 : vector<1x32xf32> to vector<16x32xf32>
    %257 = arith.addf %253, %256 : vector<16x32xf32>
    %c4_135 = arith.constant 4 : index
    %258 = memref.load %arg7[%c4_135] : memref<6xf32, #tpu.memory_space<smem>>
    %259 = vector.broadcast %258 : f32 to vector<16x32xf32>
    %260 = arith.mulf %259, %257 : vector<16x32xf32>
    %261 = arith.addf %213, %260 : vector<16x32xf32>
    %c8_136 = arith.constant 8 : index
    %c0_137 = arith.constant 0 : index
    %262 = vector.load %arg11[%c8_136, %c0_137] : memref<32x32xf32, #tpu.memory_space<vmem>>, vector<16x32xf32>
    tpu.vector_store %arg11[%c8_136, %c0_137], %261 {strides = array<i32>} : memref<32x32xf32, #tpu.memory_space<vmem>>, vector<16x32xf32>,
    %c7_138 = arith.constant 7 : index
    %c0_139 = arith.constant 0 : index
    %263 = vector.load %arg11[%c7_138, %c0_139] : memref<32x32xf32, #tpu.memory_space<vmem>>, vector<16x32xf32>
    %c8_140 = arith.constant 8 : index
    %c0_141 = arith.constant 0 : index
    %264 = vector.load %arg11[%c8_140, %c0_141] : memref<32x32xf32, #tpu.memory_space<vmem>>, vector<16x32xf32>
    %c9_142 = arith.constant 9 : index
    %c0_143 = arith.constant 0 : index
    %265 = vector.load %arg11[%c9_142, %c0_143] : memref<32x32xf32, #tpu.memory_space<vmem>>, vector<16x32xf32>
    %266 = tpu.concatenate %263, %264, %265 in 1 : vector<16x32xf32>, vector<16x32xf32>, vector<16x32xf32> -> vector<16x96xf32>
    %267 = arith.truncf %266 : vector<16x96xf32> to vector<16x96xbf16>
    %c5 = arith.constant 5 : index
    %c0_144 = arith.constant 0 : index
    %c0_145 = arith.constant 0 : index
    %268 = vector.load %arg3[%c5, %c0_144, %c0_145] : memref<6x96x64xbf16, #tpu.memory_space<vmem>>, vector<1x96x64xbf16>
    %269 = vector.shape_cast %268 : vector<1x96x64xbf16> to vector<96x64xbf16>
    %cst_146 = arith.constant dense<0.000000e+00> : vector<16x64xf32>
    %270 = tpu.matmul %267, %269, %cst_146 {dimension_numbers = #tpu.dot_dimension_numbers<[1], [0], [0], [1], [0, 0, 1, 1], [], []>} : vector<16x96xbf16>, vector<96x64xbf16>, vector<16x64xf32> -> vector<16x64xf32>
    %c5_147 = arith.constant 5 : index
    %c0_148 = arith.constant 0 : index
    %c0_149 = arith.constant 0 : index
    %271 = vector.load %arg4[%c5_147, %c0_148, %c0_149] : memref<6x1x64xf32, #tpu.memory_space<vmem>>, vector<1x1x64xf32>
    %272 = vector.shape_cast %271 : vector<1x1x64xf32> to vector<1x64xf32>
    %273 = vector.broadcast %272 : vector<1x64xf32> to vector<16x64xf32>
    %274 = arith.addf %270, %273 : vector<16x64xf32>
    %275 = vector.extract_strided_slice %274 {offsets = [0, 32], sizes = [16, 32], strides = [1, 1]} : vector<16x64xf32> to vector<16x32xf32>
    %276 = arith.negf %275 : vector<16x32xf32>
    %277 = math.exp %276 : vector<16x32xf32>
    %cst_150 = arith.constant 1.000000e+00 : f32
    %278 = vector.broadcast %cst_150 : f32 to vector<16x32xf32>
    %279 = arith.addf %278, %277 : vector<16x32xf32>
    %280 = arith.divf %278, %279 : vector<16x32xf32>
    %281 = vector.extract_strided_slice %274 {offsets = [0, 0], sizes = [16, 32], strides = [1, 1]} : vector<16x64xf32> to vector<16x32xf32>
    %282 = arith.mulf %281, %280 : vector<16x32xf32>
    %cst_151 = arith.constant dense<0.000000e+00> : vector<16xf32>
    %283 = vector.multi_reduction <add>, %282, %cst_151 [1] : vector<16x32xf32> to vector<16xf32>
    %284 = vector.shape_cast %283 : vector<16xf32> to vector<16x1xf32>
    %cst_152 = arith.constant 3.200000e+01 : f32
    %285 = vector.broadcast %cst_152 : f32 to vector<16x1xf32>
    %286 = arith.divf %284, %285 : vector<16x1xf32>
    %287 = vector.broadcast %286 : vector<16x1xf32> to vector<16x32xf32>
    %288 = arith.subf %282, %287 : vector<16x32xf32>
    %289 = arith.mulf %288, %288 : vector<16x32xf32>
    %cst_153 = arith.constant dense<0.000000e+00> : vector<16xf32>
    %290 = vector.multi_reduction <add>, %289, %cst_153 [1] : vector<16x32xf32> to vector<16xf32>
    %291 = vector.shape_cast %290 : vector<16xf32> to vector<16x1xf32>
    %cst_154 = arith.constant 3.200000e+01 : f32
    %292 = vector.broadcast %cst_154 : f32 to vector<16x1xf32>
    %293 = arith.divf %291, %292 : vector<16x1xf32>
    %294 = vector.broadcast %286 : vector<16x1xf32> to vector<16x32xf32>
    %295 = arith.subf %282, %294 : vector<16x32xf32>
    %cst_155 = arith.constant 9.99999974E-6 : f32
    %296 = vector.broadcast %cst_155 : f32 to vector<16x1xf32>
    %297 = arith.addf %293, %296 : vector<16x1xf32>
    %298 = math.rsqrt %297 : vector<16x1xf32>
    %299 = vector.broadcast %298 : vector<16x1xf32> to vector<16x32xf32>
    %300 = arith.mulf %295, %299 : vector<16x32xf32>
    %c5_156 = arith.constant 5 : index
    %c0_157 = arith.constant 0 : index
    %c0_158 = arith.constant 0 : index
    %301 = vector.load %arg5[%c5_156, %c0_157, %c0_158] : memref<6x1x32xf32, #tpu.memory_space<vmem>>, vector<1x1x32xf32>
    %302 = vector.shape_cast %301 : vector<1x1x32xf32> to vector<1x32xf32>
    %303 = vector.broadcast %302 : vector<1x32xf32> to vector<16x32xf32>
    %304 = arith.mulf %300, %303 : vector<16x32xf32>
    %c5_159 = arith.constant 5 : index
    %c0_160 = arith.constant 0 : index
    %c0_161 = arith.constant 0 : index
    %305 = vector.load %arg6[%c5_159, %c0_160, %c0_161] : memref<6x1x32xf32, #tpu.memory_space<vmem>>, vector<1x1x32xf32>
    %306 = vector.shape_cast %305 : vector<1x1x32xf32> to vector<1x32xf32>
    %307 = vector.broadcast %306 : vector<1x32xf32> to vector<16x32xf32>
    %308 = arith.addf %304, %307 : vector<16x32xf32>
    %c5_162 = arith.constant 5 : index
    %309 = memref.load %arg7[%c5_162] : memref<6xf32, #tpu.memory_space<smem>>
    %310 = vector.broadcast %309 : f32 to vector<16x32xf32>
    %311 = arith.mulf %310, %308 : vector<16x32xf32>
    %312 = arith.addf %264, %311 : vector<16x32xf32>
    %c8_163 = arith.constant 8 : index
    %c0_164 = arith.constant 0 : index
    %313 = vector.load %arg11[%c8_163, %c0_164] : memref<32x32xf32, #tpu.memory_space<vmem>>, vector<16x32xf32>
    tpu.vector_store %arg11[%c8_163, %c0_164], %312 {strides = array<i32>} : memref<32x32xf32, #tpu.memory_space<vmem>>, vector<16x32xf32>,
    %c8_165 = arith.constant 8 : index
    %c0_166 = arith.constant 0 : index
    %314 = vector.load %arg11[%c8_165, %c0_166] : memref<32x32xf32, #tpu.memory_space<vmem>>, vector<16x32xf32>
    %c0_167 = arith.constant 0 : index
    %c0_168 = arith.constant 0 : index
    %315 = vector.load %arg8[%c0_167, %c0_168] : memref<1x32xf32, #tpu.memory_space<vmem>>, vector<1x32xf32>
    %cst_169 = arith.constant dense<0.000000e+00> : vector<1x16xf32>
    %316 = tpu.matmul %315, %314, %cst_169 {dimension_numbers = #tpu.dot_dimension_numbers<[1], [1], [0], [0], [0, 0, 1, 0], [], []>} : vector<1x32xf32>, vector<16x32xf32>, vector<1x16xf32> -> vector<1x16xf32>
    %c0_170 = arith.constant 0 : index
    %317 = memref.load %arg9[%c0_170] : memref<1xf32, #tpu.memory_space<smem>>
    %318 = vector.broadcast %317 : f32 to vector<1x16xf32>
    %319 = arith.addf %316, %318 : vector<1x16xf32>
    %320 = arith.negf %319 : vector<1x16xf32>
    %321 = math.exp %320 : vector<1x16xf32>
    %cst_171 = arith.constant 1.000000e+00 : f32
    %322 = vector.broadcast %cst_171 : f32 to vector<1x16xf32>
    %323 = arith.addf %322, %321 : vector<1x16xf32>
    %324 = arith.divf %322, %323 : vector<1x16xf32>
    %c0_172 = arith.constant 0 : index
    %c0_173 = arith.constant 0 : index
    %c0_174 = arith.constant 0 : index
    %325 = vector.load %arg10[%c0_172, %c0_173, %c0_174] : memref<1x1x16xf32, #tpu.memory_space<vmem>>, vector<1x1x16xf32>
    %326 = vector.shape_cast %325 : vector<1x1x16xf32> to vector<1x16xf32>
    %327 = vector.shape_cast %324 : vector<1x16xf32> to vector<1x1x16xf32>
    tpu.vector_store %arg10[%c0_172, %c0_173, %c0_174], %327 {strides = array<i32>} : memref<1x1x16xf32, #tpu.memory_space<vmem>>, vector<1x1x16xf32>,
    return
  }
  func.func @transform_0(%arg0: i32) -> (i32, i32, i32) {
    %c0_i32 = arith.constant 0 : i32
    %c0_i32_0 = arith.constant 0 : i32
    %c0_i32_1 = arith.constant 0 : i32
    return %arg0, %c0_i32, %c0_i32_0 : i32, i32, i32
  }
  func.func @transform_1(%arg0: i32) -> (i32, i32) {
    %c0_i32 = arith.constant 0 : i32
    %c0_i32_0 = arith.constant 0 : i32
    %c0_i32_1 = arith.constant 0 : i32
    return %c0_i32, %c0_i32_0 : i32, i32
  }
  func.func @transform_2(%arg0: i32) -> (i32, i32, i32) {
    %c0_i32 = arith.constant 0 : i32
    %c0_i32_0 = arith.constant 0 : i32
    %c0_i32_1 = arith.constant 0 : i32
    %c0_i32_2 = arith.constant 0 : i32
    return %c0_i32, %c0_i32_0, %c0_i32_1 : i32, i32, i32
  }
  func.func @transform_3(%arg0: i32) -> (i32, i32, i32) {
    %c0_i32 = arith.constant 0 : i32
    %c0_i32_0 = arith.constant 0 : i32
    %c0_i32_1 = arith.constant 0 : i32
    %c0_i32_2 = arith.constant 0 : i32
    return %c0_i32, %c0_i32_0, %c0_i32_1 : i32, i32, i32
  }
  func.func @transform_4(%arg0: i32) -> (i32, i32, i32) {
    %c0_i32 = arith.constant 0 : i32
    %c0_i32_0 = arith.constant 0 : i32
    %c0_i32_1 = arith.constant 0 : i32
    %c0_i32_2 = arith.constant 0 : i32
    return %c0_i32, %c0_i32_0, %c0_i32_1 : i32, i32, i32
  }
  func.func @transform_5(%arg0: i32) -> (i32, i32, i32) {
    %c0_i32 = arith.constant 0 : i32
    %c0_i32_0 = arith.constant 0 : i32
    %c0_i32_1 = arith.constant 0 : i32
    %c0_i32_2 = arith.constant 0 : i32
    return %c0_i32, %c0_i32_0, %c0_i32_1 : i32, i32, i32
  }
  func.func @transform_6(%arg0: i32) -> i32 {
    %c0_i32 = arith.constant 0 : i32
    %c0_i32_0 = arith.constant 0 : i32
    return %c0_i32 : i32
  }
  func.func @transform_7(%arg0: i32) -> (i32, i32) {
    %c0_i32 = arith.constant 0 : i32
    %c0_i32_0 = arith.constant 0 : i32
    %c0_i32_1 = arith.constant 0 : i32
    return %c0_i32, %c0_i32_0 : i32, i32
  }
  func.func @transform_8(%arg0: i32) -> i32 {
    %c0_i32 = arith.constant 0 : i32
    %c0_i32_0 = arith.constant 0 : i32
    return %c0_i32 : i32
  }
  func.func @transform_9(%arg0: i32) -> (i32, i32, i32) {
    %c0_i32 = arith.constant 0 : i32
    %c0_i32_0 = arith.constant 0 : i32
    %c0_i32_1 = arith.constant 0 : i32
    return %arg0, %c0_i32, %c0_i32_0 : i32, i32, i32
  }
}

</mosaic_0001>

<bundles_post_ra>
// kernel: selector2_forward.1
= control target key start
LH: loop header
LB: loop body
LE: loop exit
PB: predicated region body
PF: predicated region fallthrough
CT: control target
= control target key end

     0   :  { %s3012_s0 = inlined_call_operand.vmem [shape: f32[2,16,32], index: 0, kind: input, shape index: {}]   ;;  %s3013_s1 = inlined_call_operand.vmem [shape: bf16[32,32], index: 1, kind: input, shape index: {}]   ;;  %s3014_s2 = inlined_call_operand.vmem [shape: bf16[6,96,64], index: 2, kind: input, shape index: {}]   ;;  %s3015_s3 = inlined_call_operand.vmem [shape: f32[6,1,64], index: 3, kind: input, shape index: {}]   ;;  %s3016_s4 = inlined_call_operand.vmem [shape: f32[6,1,32], index: 4, kind: input, shape index: {}]   ;;  %s3017_s5 = inlined_call_operand.vmem [shape: f32[6,1,32], index: 5, kind: input, shape index: {}]   ;;  %s3018_s6 = inlined_call_operand.vmem [shape: f32[6], index: 6, kind: input, shape index: {}]   ;;  %s3019_s7 = inlined_call_operand.vmem [shape: f32[1,32], index: 7, kind: input, shape index: {}]   ;;  %s3020_s8 = inlined_call_operand.<no memory space> [shape: f32[1], index: 8, kind: input, shape index: {}]   ;;  %s3021_s9 = inlined_call_operand.hbm [shape: f32[2,1,16], index: 9, kind: output, shape index: {}]  }
   0x1   :  { %14 = sst [smem:[#allocation3]] %s3020_s8 }
   0x2   :  { %15 = vsyncpa [#allocation6], 0 }
   0x3   :  { %16 = vsyncpa [#allocation5], 0 }
   0x4   :  { %18 = vsyncpa [#allocation5 + $0x1], 0  ;;  %s2515_s11 = smov 0   ;;  %s2517_s12 = smov 0  }
   0x5   :  { %s2519_s13 = smov 0   ;;  %s2521_s14 = smov 0  }
   0x6 LB: > { %s2536_s8 = sadd.s32 4294967295, %s2452_s14   ;;  %s1807_s15 = sadd.s32 4294967294, %s2452_s14   ;;  %s2452_s14 = sphi %s2521_s14, %s3028_s14   ;;  %s2448_s13 = sphi %s2519_s13, %s3027_s13   ;;  %s2444_s12 = sphi %s2517_s12, %s3026_s12   ;;  %s2440_s11 = sphi %s2515_s11, %s3025_s11  }
   0x7   : > { %s2540_s16 = sadd.s32 1, %s2452_s14   ;;  %s225_s17 = sadd.s32 1, %s2448_s13 }
   0x8   : > { %s222_s18 = ssub.s32 %s2452_s14, %s2540_s16  ;;  %p235_p0 = scmp.ne.s32.totalorder %s2448_s13, %s2444_s12 }
   0x9   : > { %p223_p1 = scmp.eq.s32.totalorder %s222_s18, 0  ;;  %p236_p2 = scmp.eq.s32.totalorder %s2536_s8, 1 }
   0xa   : > { %p241_p3 = scmp.ne.s32.totalorder %s2444_s12, %s2440_s11  ;;  %p242_p4 = scmp.eq.s32.totalorder %s1807_s15, 1 }
   0xb   : > { %s2551_s19 = scalar_select %p223_p1, %s2448_s13, %s225_s17  }
   0xc   : > { %p2553_p5 = por %p236_p2, %p235_p0  ;;  %p2557_p6 = por %p242_p4, %p241_p3 }
   0xd   : > { %p1808_p7 = scmp.ge.s32.totalorder %s2452_s14, 1  ;;  %p249_p8 = scmp.lt.s32.totalorder %s2452_s14, 3 }
   0xe   : > { %p2155_p9 = scmp.eq.s32.totalorder %s2536_s8, 0  ;;  %s277_s25 = sshll.u32 %s3018_s6, 4  ;;  %s278_s25 = int_to_ptr.vmem [resolvable:$true] %s277_s25 }
   0xf   : > { %p2564_p10 = pnand %p1808_p7, %p249_p8  ;;  %s2371_s26 = scalar_lea.vmem %s278_s25, 16 }
  0x10   : > { %p2372_p13 = scmp.ne.s32.totalorder %s278_s25, %s2371_s26  ;;  %p2379_p3 = scmp.lt.s32.totalorder %s278_s25, %s278_s25 }
  0x11   : > { %p2147_p11 = pneg %p2564_p10  ;;  %p2380_p4 = scmp.lt.s32.totalorder %s2371_s26, %s2371_s26 }
  0x13   : > { %p2148_p12 = pnand %p2155_p9, %p2147_p11  ;;  %p2381_p7 = por %p2380_p4, %p2379_p3 }
  0x15   : > { %p2373_p0 = pneg %p2148_p12 }
  0x17   : > { %p2374_p1 = pnand %p2373_p0, %p2372_p13 }
  0x19   : > { %p2375_p2 = pneg %p2374_p1 }
  0x1b   : > { %p2382_p8 = pnand %p2381_p7, %p2375_p2 }
  0x1d   : > { %2385 = shalt.err (!%p2382_p8)
}
  0x1e   : > { %s2454_s27 = smov [#allocation4]   ;;  %304 = sbr.rel (%p2564_p10) target bundleno = 5394 (0x1512), region = 56 }
  0x1f   : > { %2150 = dma.vmem_to_smem (!%p2148_p12), %s278_s25, 16, %s2454_s27, [#allocation6]  }
  0x25   : > { %2431 = dma.done.wait (%p2155_p9), [#allocation6], 16  }
  0x26   : > { %2433 = vsyncadd (%p2155_p9), [#allocation6], 4294967280 }
  0x27   : > { %310 = sfence }
  0x28   : > { %v2257_v0 = vld [vmem:[%s3013_s1] sm:$0xff]   ;;  %v2455_v1 = vmov 0.0   ;;  %v2258_v2 = vld [vmem:[%s3013_s1 + $0x8] sm:$0xff]   ;;  %vm2456_vm0 = vmmov 0   ;;  %p340_p9 = scmp.lt.s32.totalorder %s2536_s8, 1  ;;  %vm365_vm1 = vcmask 261120  }
  0x29   : > { %2026 = vmatprep.subr.bf16.mxu0 %v2455_v1  ;;  %2034 = vmatprep.subr.bf16.mxu1 %v2455_v1  ;;  %410 = vst.msk [vmem:[#allocation2] sm:$0xff] %vm365_vm1, %v2455_v1  ;;  %411 = vst.msk [vmem:[#allocation2 + $0x8] sm:$0xff] %vm365_vm1, %v2455_v1  ;;  %v2259_v6 = vld [vmem:[%s3014_s2] sm:$0xff]   ;;  %v2260_v7 = vld [vmem:[%s3014_s2 + $0x8] sm:$0xff]   ;;  %s2458_s24 = smov 64   ;;  %vm440_vm2 = vcmask 523264  }
  0x2a   : > { %2027 = vmatpush3.bf16.msra.mxu0 %v2257_v0  ;;  %2030 = vmatprep.mubr.msk.bf16.mxu0 %vm2456_vm0, %v2455_v1  ;;  %412 = vst.msk [vmem:[#allocation2 + $0x10] sm:$0xff] %vm365_vm1, %v2455_v1  ;;  %413 = vst.msk [vmem:[#allocation2 + $0x18] sm:$0xff] %vm365_vm1, %v2455_v1  ;;  %s341_s15 = scalar_select %p340_p9, %s2536_s8, 1  ;;  %v2261_v8 = vld [vmem:[%s3014_s2 + $0x10] sm:$0xff]   ;;  %v2262_v9 = vld [vmem:[%s3014_s2 + $0x18] sm:$0xff]   ;;  %vm499_vm3 = vcmask 785408  }
  0x2b   : > { %2028 = vmatprep.subr.bf16.mxu0 %v2455_v1  ;;  %2046 = vmatprep.mubr.msk.bf16.mxu1 %vm2456_vm0, %v2455_v1  ;;  %v2263_v12 = vld [vmem:[%s3014_s2 + $0x20] sm:$0xff]   ;;  %v2264_v15 = vld [vmem:[%s3014_s2 + $0x28] sm:$0xff]   ;;  %s2459_s27 = smov 96   ;;  %s611_s28 = sld [smem:[#allocation4]]  ;;  %vm2139_vm4 = vmpackc.low %vm365_vm1, %vm365_vm1  ;;  %vm1725_vm5 = vcmask 122880  }
  0x2c   : > { %s1977_s17 = sshll.u32 %s341_s15, 4  ;;  %2035 = vmatpush3.bf16.msra.mxu1 %v2259_v6  ;;  %v1818_v35 = vld [vmem:[%s3015_s3] ss:$0 sm:$0xff]  ;;  %v2268_v6 = vld [vmem:[%s3014_s2 + $0x48] sm:$0xff]   ;;  %s1857_s26 = sld [smem:[#allocation4 + $0x1]] }
  0x2d   : > { %s344_s23 = scalar_lea.vmem %s3012_s0, %s1977_s17  ;;  %2036 = vmatprep.subr.bf16.mxu1 %v2455_v1  ;;  %s1885_s25 = sld [smem:[#allocation4 + $0x2]] }
  0x2e   : > { %2029 = vmatpush3.bf16.msra.mxu0 %v2258_v2  ;;  %v346_v3 = vld [vmem:[%s344_s23] sm:$0xff]  ;;  %v347_v4 = vld [vmem:[%s344_s23 + $0x8] sm:$0xff]  ;;  %s2457_s23 = smov 32   ;;  %s1913_s22 = sld [smem:[#allocation4 + $0x3]] }
  0x2f   : > { %2050 = vmatprep.subr.bf16.mxu0 %v2455_v1  ;;  %v348_v5 = vpack.c.bf16 %v347_v4, %v346_v3  ;;  %v2265_v3 = vld [vmem:[%s3014_s2 + $0x30] sm:$0xff]   ;;  %v2266_v4 = vld [vmem:[%s3014_s2 + $0x38] sm:$0xff]   ;;  %s1941_s18 = sld [smem:[#allocation4 + $0x4]]  ;;  %s1974_s29 = sshll.u32 %s2536_s8, 4 }
  0x30   : > { %2037 = vmatpush3.bf16.msra.mxu1 %v2260_v7  ;;  %v2269_v7 = vld [vmem:[%s3014_s2 + $0x50] sm:$0xff]   ;;  %s2970_s10 = scalar_lea.hbm %s3021_s9, %s1974_s29  ;;  %s2461_s8 = smov [#allocation7]  }
  0x31   : > { %2031 = vmatmul.mubr.msk.bf16.vlgmr.msra.gmra.mrb[0].mxu0 %vm365_vm1, %v348_v5  ;;  %2038 = vmatprep.subr.bf16.mxu1 %v2455_v1  ;;  %v2267_v5 = vld [vmem:[%s3014_s2 + $0x40] sm:$0xff]  }
  0x32   : > { %2062 = vmatprep.mubr.msk.bf16.mxu0 %vm2456_vm0, %v2455_v1  ;;  %2051 = vmatpush3.bf16.msra.mxu0 %v2265_v3 }
  0x33   : > { %2052 = vmatprep.subr.bf16.mxu0 %v2455_v1 }
  0x34   : > { %2039 = vmatpush3.bf16.msra.mxu1 %v2261_v8 }
  0x35   : > { %2040 = vmatprep.subr.bf16.mxu1 %v2455_v1 }
  0x36   : > { %2053 = vmatpush3.bf16.msra.mxu0 %v2266_v4 }
  0x37   : > { %2054 = vmatprep.subr.bf16.mxu0 %v2455_v1 }
  0x38   : > { %2041 = vmatpush3.bf16.msra.mxu1 %v2262_v9 }
  0x39   : > { %2042 = vmatprep.subr.bf16.mxu1 %v2455_v1 }
  0x3a   : > { %2055 = vmatpush3.bf16.msra.mxu0 %v2267_v5 }
  0x3b   : > { %2056 = vmatprep.subr.bf16.mxu0 %v2455_v1 }
  0x3c   : > { %2043 = vmatpush3.bf16.msra.mxu1 %v2263_v12 }
  0x3d   : > { %2044 = vmatprep.subr.bf16.mxu1 %v2455_v1 }
  0x3e   : > { %2057 = vmatpush3.bf16.msra.mxu0 %v2268_v6 }
  0x3f   : > { %2058 = vmatprep.subr.bf16.mxu0 %v2455_v1 }
  0x40   : > { %2045 = vmatpush3.bf16.msra.mxu1 %v2264_v15  ;;  %v1828_v15 = vld [vmem:[%s3016_s4] ss:$0 sm:$0xff] }
  0x41   : > { %2066 = vmatprep.subr.bf16.mxu1 %v2455_v1 }
  0x42   : > { %2059 = vmatpush3.bf16.msra.mxu0 %v2269_v7 }
  0x43   : > { %2060 = vmatprep.subr.bf16.mxu0 %v2455_v1 }
 0x104   : > { %v403_v10 = vpop.f32.mrb[0].mxu0 }
 0x105   : > { %414 = vst.msk [vmem:[#allocation2 + $0x8] sm:$0xff] %vm365_vm1, %v403_v10  ;;  %v2032_v11 = vpop.f32.mrb[1].mxu0 }
 0x106   : > { %v406_v13 = vpop.f32.mrb[2].mxu0 }
 0x107   : > { %415 = vst.msk [vmem:[#allocation2 + $0x10] sm:$0xff] %vm365_vm1, %v406_v13  ;;  %v2033_v14 = vpop.f32.mrb[3].mxu0 }
 0x10c   : > { %v2637_v16 = vld [vmem:[#allocation2 + $0x8] sm:$0xff] }
 0x10d   : > { %v416_v27 = vld [vmem:[#allocation2 + $0x7] sm:$0xff] }
 0x10e   : > { %v2639_v17 = vld [vmem:[#allocation2 + $0x10] sm:$0xff] }
 0x10f   : > { %v2197_v18 = vpack.i.bf16 %v2639_v17, %v2637_v16  ;;  %v420_v19 = vld [vmem:[#allocation2 + $0x9] sm:$0xff]  ;;  %v421_v20 = vld [vmem:[#allocation2 + $0x11] sm:$0xff] }
 0x110   : > { %v2202_v21 = vpack.i.bf16 %v421_v20, %v420_v19  ;;  %v417_v26 = vld [vmem:[#allocation2 + $0xf] sm:$0xff]  ;;  %v1829_v19 = vld [vmem:[%s3017_s5] ss:$0 sm:$0xff] }
 0x111   : > { %2198 = vrot.lane.b32.xlu0 %v2197_v18, %s2457_s23 }
 0x115   : > { %2203 = vrot.lane.b32.xlu0 %v2202_v21, %s2458_s24 }
 0x183   : > { %v2199_v22 = vpop.permute.xlu0 %2198 }
 0x184   : > { %v2201_v23 = vunpack.i.h.bf16 %v2199_v22  ;;  %v2200_v24 = vunpack.i.l.bf16 %v2199_v22  ;;  %v612_v22 = vstv %s611_s28  ;;  %s338_s28 = sand.u32 1, %s2444_s12  }
 0x185   : > { %s339_s30 = scalar_lea.vmem [#allocation7], %s338_s28  ;;  %s1728_s15 = scalar_lea.sflag [#allocation5], %s338_s28 }
 0x186   : > { %v438_v30 = vsel %vm365_vm1, %v416_v27, %v2200_v24  ;;  %v439_v31 = vsel %vm365_vm1, %v417_v26, %v2201_v23 }
 0x187   : > { %v2204_v25 = vpop.permute.xlu0 %2203 }
 0x188   : > { %v2206_v28 = vunpack.i.h.bf16 %v2204_v25  ;;  %v2205_v29 = vunpack.i.l.bf16 %v2204_v25 }
 0x18a   : > { %v441_v32 = vsel %vm440_vm2, %v438_v30, %v2205_v29  ;;  %v442_v33 = vsel %vm440_vm2, %v439_v31, %v2206_v28  ;;  %v2270_v31 = vld [vmem:[%s3014_s2 + $0x58] sm:$0xff]  }
 0x18b   : > { %v443_v34 = vpack.c.bf16 %v442_v33, %v441_v32  ;;  %2061 = vmatpush3.bf16.msra.mxu0 %v2270_v31  ;;  %v1854_v31 = vld [vmem:[%s3016_s4 + $0x1] ss:$0 sm:$0xff] }
 0x18c   : > { %2082 = vmatprep.subr.bf16.mxu0 %v2455_v1 }
 0x18d   : > { %2047 = vmatmul.mubr.msk.bf16.vlgmr.msra.gmra.mrb[0].mxu1 %vm499_vm3, %v443_v34 }
 0x18e   : > { %2078 = vmatprep.mubr.msk.bf16.mxu1 %vm2456_vm0, %v2455_v1 }
 0x260   : > { %v537_v36 = vpop.f32.mrb[0].mxu1 }
 0x261   : > { %v538_v37 = vadd.f32 %v1818_v35, %v537_v36  ;;  %v2048_v38 = vpop.f32.mrb[1].mxu1 }
 0x262   : > { %v540_v39 = vpop.f32.mrb[2].mxu1 }
 0x263   : > { %v1826_v40 = vmul.f32 -1.442695, %v538_v37  ;;  %v541_v41 = vadd.f32 %v1818_v35, %v540_v39  ;;  %v2049_v42 = vpop.f32.mrb[3].mxu1 }
 0x265   : > { %2295 = vpow2.f32 %v1826_v40  ;;  %v1827_v43 = vmul.f32 -1.442695, %v541_v41 }
 0x267   : > { %2297 = vpow2.f32 %v1827_v43 }
 0x26f   : > { %v2296_v44 = vpop.eup %2295 }
 0x270   : > { %v550_v45 = vadd.f32 1.0, %v2296_v44 }
 0x271   : > { %v2298_v46 = vpop.eup %2297 }
 0x272   : > { %2299 = vrcp.f32 %v550_v45  ;;  %v551_v47 = vadd.f32 1.0, %v2298_v46 }
 0x274   : > { %2301 = vrcp.f32 %v551_v47 }
 0x27c   : > { %v2300_v48 = vpop.eup %2299 }
 0x27d   : > { %558 = vrot.lane.b32.xlu1 %v2300_v48, %s2459_s27 }
 0x27e   : > { %v2302_v49 = vpop.eup %2301 }
 0x281   : > { %560 = vrot.lane.b32.xlu1 %v2302_v49, %s2459_s27  ;;  %v1843_v49 = vld [vmem:[%s3015_s3 + $0x1] ss:$0 sm:$0xff] }
 0x2ef   : > { %v559_v50 = vpop.permute.xlu1 %558 }
 0x2f0   : > { %v564_v51 = vmul.f32 %v559_v50, %v538_v37 }
 0x2f2   : > { %v566_v52 = vsel %vm365_vm1, %v564_v51, 0.0 }
 0x2f3   : > { %567 = vadd.xlane.f32.xlu0 %v566_v52  ;;  %v561_v53 = vpop.permute.xlu1 %560 }
 0x2f4   : > { %v565_v54 = vmul.f32 %v561_v53, %v541_v41 }
 0x2f6   : > { %v569_v55 = vsel %vm365_vm1, %v565_v54, 0.0 }
 0x2f7   : > { %570 = vadd.xlane.f32.xlu1 %v569_v55 }
 0x380   : > { %v568_v56 = vpop.xlane.xlu0 %567 }
 0x381   : > { %v573_v57 = vmul.f32 0.03125, %v568_v56 }
 0x383   : > { %v575_v58 = vsub.f32 %v564_v51, %v573_v57 }
 0x384   : > { %v571_v59 = vpop.xlane.xlu1 %570 }
 0x385   : > { %v574_v60 = vmul.f32 0.03125, %v571_v59  ;;  %v577_v61 = vmul.f32 %v575_v58, %v575_v58 }
 0x387   : > { %v576_v62 = vsub.f32 %v565_v54, %v574_v60  ;;  %v579_v63 = vsel %vm365_vm1, %v577_v61, 0.0 }
 0x388   : > { %580 = vadd.xlane.f32.xlu0 %v579_v63 }
 0x389   : > { %v578_v0 = vmul.f32 %v576_v62, %v576_v62 }
 0x38b   : > { %v582_v2 = vsel %vm365_vm1, %v578_v0, 0.0 }
 0x38c   : > { %583 = vadd.xlane.f32.xlu0 %v582_v2 }
 0x415   : > { %v581_v8 = vpop.xlane.xlu0 %580 }
 0x416   : > { %v585_v9 = vmul.f32 0.03125, %v581_v8 }
 0x418   : > { %v587_v10 = vadd.f32 1e-05, %v585_v9 }
 0x419   : > { %v584_v11 = vpop.xlane.xlu0 %583 }
 0x41a   : > { %2303 = vrsqrt.f32 %v587_v10  ;;  %v586_v12 = vmul.f32 0.03125, %v584_v11 }
 0x41c   : > { %v588_v13 = vadd.f32 1e-05, %v586_v12 }
 0x41e   : > { %2305 = vrsqrt.f32 %v588_v13 }
 0x424   : > { %v2304_v14 = vpop.eup %2303 }
 0x425   : > { %v591_v18 = vmul.f32 %v2304_v14, %v575_v58 }
 0x427   : > { %v600_v20 = vmul.f32 %v1828_v15, %v591_v18 }
 0x428   : > { %v2306_v21 = vpop.eup %2305 }
 0x429   : > { %v609_v23 = vadd.f32 %v1829_v19, %v600_v20  ;;  %v592_v24 = vmul.f32 %v2306_v21, %v576_v62  ;;  %v2272_v20 = vld [vmem:[%s3014_s2 + $0x68] sm:$0xff]   ;;  %v2273_v21 = vld [vmem:[%s3014_s2 + $0x70] sm:$0xff]  }
 0x42b   : > { %v613_v25 = vmul.f32 %v612_v22, %v609_v23  ;;  %v601_v26 = vmul.f32 %v1828_v15, %v592_v24  ;;  %v2275_v23 = vld [vmem:[%s3014_s2 + $0x80] sm:$0xff]  }
 0x42d   : > { %v615_v27 = vadd.f32 %v613_v25, %v2637_v16  ;;  %v610_v28 = vadd.f32 %v1829_v19, %v601_v26  ;;  %v2271_v19 = vld [vmem:[%s3014_s2 + $0x60] sm:$0xff]  }
 0x42e   : > { %2067 = vmatpush3.bf16.msra.mxu1 %v2271_v19 }
 0x42f   : > { %617 = vst.msk [vmem:[#allocation2 + $0x8] sm:$0xff] %vm365_vm1, %v615_v27  ;;  %v614_v29 = vmul.f32 %v612_v22, %v610_v28  ;;  %2068 = vmatprep.subr.bf16.mxu1 %v2455_v1  ;;  %v2274_v22 = vld [vmem:[%s3014_s2 + $0x78] sm:$0xff]  }
 0x431   : > { %v616_v30 = vadd.f32 %v614_v29, %v2639_v17 }
 0x432   : > { %2069 = vmatpush3.bf16.msra.mxu1 %v2272_v20 }
 0x433   : > { %618 = vst.msk [vmem:[#allocation2 + $0x10] sm:$0xff] %vm365_vm1, %v616_v30  ;;  %2070 = vmatprep.subr.bf16.mxu1 %v2455_v1 }
 0x436   : > { %v2695_v32 = vld [vmem:[#allocation2 + $0x8] sm:$0xff]  ;;  %2071 = vmatpush3.bf16.msra.mxu1 %v2273_v21 }
 0x437   : > { %v619_v42 = vld [vmem:[#allocation2 + $0x6] sm:$0xff]  ;;  %2072 = vmatprep.subr.bf16.mxu1 %v2455_v1 }
 0x43a   : > { %v623_v33 = vld [vmem:[#allocation2 + $0xa] sm:$0xff]  ;;  %v624_v34 = vld [vmem:[#allocation2 + $0x12] sm:$0xff]  ;;  %2073 = vmatpush3.bf16.msra.mxu1 %v2274_v22 }
 0x43b   : > { %v2697_v16 = vld [vmem:[#allocation2 + $0x10] sm:$0xff]  ;;  %v2212_v35 = vpack.i.bf16 %v624_v34, %v623_v33  ;;  %2074 = vmatprep.subr.bf16.mxu1 %v2455_v1  ;;  %v1856_v34 = vld [vmem:[%s3017_s5 + $0x1] ss:$0 sm:$0xff] }
 0x43c   : > { %v2207_v36 = vpack.i.bf16 %v2697_v16, %v2695_v32  ;;  %v620_v43 = vld [vmem:[#allocation2 + $0xe] sm:$0xff] }
 0x43d   : > { %2213 = vrot.lane.b32.xlu0 %v2212_v35, %s2458_s24 }
 0x43e   : > { %2208 = vrot.lane.b32.xlu1 %v2207_v36, %s2457_s23  ;;  %2075 = vmatpush3.bf16.msra.mxu1 %v2275_v23 }
 0x43f   : > { %2076 = vmatprep.subr.bf16.mxu1 %v2455_v1 }
 0x4af   : > { %v2214_v17 = vpop.permute.xlu0 %2213 }
 0x4b0   : > { %v2209_v37 = vpop.permute.xlu1 %2208  ;;  %v2216_v38 = vunpack.i.h.bf16 %v2214_v17  ;;  %v2215_v39 = vunpack.i.l.bf16 %v2214_v17  ;;  %v816_v17 = vstv %s1857_s26  ;;  %s1638_s26 = sld [smem:[#allocation3]] }
 0x4b1   : > { %v2211_v40 = vunpack.i.h.bf16 %v2209_v37  ;;  %v2210_v41 = vunpack.i.l.bf16 %v2209_v37 }
 0x4b3   : > { %v641_v44 = vsel %vm365_vm1, %v619_v42, %v2210_v41  ;;  %v642_v45 = vsel %vm365_vm1, %v620_v43, %v2211_v40 }
 0x4b4   : > { %v643_v46 = vsel %vm440_vm2, %v641_v44, %v2215_v39  ;;  %v644_v47 = vsel %vm440_vm2, %v642_v45, %v2216_v38  ;;  %v2276_v45 = vld [vmem:[%s3014_s2 + $0x88] sm:$0xff]  }
 0x4b5   : > { %v645_v48 = vpack.c.bf16 %v644_v47, %v643_v46  ;;  %2077 = vmatpush3.bf16.msra.mxu1 %v2276_v45 }
 0x4b6   : > { %2098 = vmatprep.subr.bf16.mxu1 %v2455_v1 }
 0x4b7   : > { %2063 = vmatmul.mubr.msk.bf16.vlgmr.msra.gmra.mrb[4].mxu0 %vm499_vm3, %v645_v48 }
 0x4b8   : > { %2094 = vmatprep.mubr.msk.bf16.mxu0 %vm2456_vm0, %v2455_v1 }
 0x58a   : > { %v740_v50 = vpop.f32.mrb[4].mxu0 }
 0x58b   : > { %v741_v51 = vadd.f32 %v1843_v49, %v740_v50  ;;  %v2064_v52 = vpop.f32.mrb[5].mxu0 }
 0x58c   : > { %v743_v53 = vpop.f32.mrb[6].mxu0 }
 0x58d   : > { %v1851_v54 = vmul.f32 -1.442695, %v741_v51  ;;  %v744_v55 = vadd.f32 %v1843_v49, %v743_v53  ;;  %v2065_v56 = vpop.f32.mrb[7].mxu0 }
 0x58f   : > { %2307 = vpow2.f32 %v1851_v54  ;;  %v1852_v57 = vmul.f32 -1.442695, %v744_v55 }
 0x591   : > { %2309 = vpow2.f32 %v1852_v57 }
 0x599   : > { %v2308_v58 = vpop.eup %2307 }
 0x59a   : > { %v753_v59 = vadd.f32 1.0, %v2308_v58 }
 0x59b   : > { %v2310_v60 = vpop.eup %2309 }
 0x59c   : > { %2311 = vrcp.f32 %v753_v59  ;;  %v754_v61 = vadd.f32 1.0, %v2310_v60 }
 0x59e   : > { %2313 = vrcp.f32 %v754_v61 }
 0x5a6   : > { %v2312_v62 = vpop.eup %2311 }
 0x5a7   : > { %761 = vrot.lane.b32.xlu1 %v2312_v62, %s2459_s27  ;;  %v1871_v62 = vld [vmem:[%s3015_s3 + $0x2] ss:$0 sm:$0xff] }
 0x5a8   : > { %v2314_v63 = vpop.eup %2313 }
 0x5ab   : > { %763 = vrot.lane.b32.xlu1 %v2314_v63, %s2459_s27 }
 0x619   : > { %v762_v0 = vpop.permute.xlu1 %761 }
 0x61a   : > { %v767_v2 = vmul.f32 %v762_v0, %v741_v51 }
 0x61c   : > { %v769_v3 = vsel %vm365_vm1, %v767_v2, 0.0 }
 0x61d   : > { %770 = vadd.xlane.f32.xlu0 %v769_v3  ;;  %v764_v4 = vpop.permute.xlu1 %763 }
 0x61e   : > { %v768_v5 = vmul.f32 %v764_v4, %v744_v55 }
 0x620   : > { %v772_v6 = vsel %vm365_vm1, %v768_v5, 0.0 }
 0x621   : > { %773 = vadd.xlane.f32.xlu1 %v772_v6 }
 0x6aa   : > { %v771_v7 = vpop.xlane.xlu0 %770 }
 0x6ab   : > { %v775_v8 = vmul.f32 0.03125, %v771_v7 }
 0x6ad   : > { %v777_v9 = vsub.f32 %v767_v2, %v775_v8 }
 0x6ae   : > { %v774_v10 = vpop.xlane.xlu1 %773 }
 0x6af   : > { %v776_v11 = vmul.f32 0.03125, %v774_v10  ;;  %v779_v12 = vmul.f32 %v777_v9, %v777_v9 }
 0x6b1   : > { %v778_v13 = vsub.f32 %v768_v5, %v776_v11  ;;  %v781_v14 = vsel %vm365_vm1, %v779_v12, 0.0 }
 0x6b2   : > { %782 = vadd.xlane.f32.xlu0 %v781_v14 }
 0x6b3   : > { %v780_v15 = vmul.f32 %v778_v13, %v778_v13 }
 0x6b5   : > { %v784_v18 = vsel %vm365_vm1, %v780_v15, 0.0 }
 0x6b6   : > { %785 = vadd.xlane.f32.xlu0 %v784_v18 }
 0x73f   : > { %v783_v24 = vpop.xlane.xlu0 %782 }
 0x740   : > { %v787_v25 = vmul.f32 0.03125, %v783_v24 }
 0x742   : > { %v789_v26 = vadd.f32 1e-05, %v787_v25 }
 0x743   : > { %v786_v27 = vpop.xlane.xlu0 %785 }
 0x744   : > { %2315 = vrsqrt.f32 %v789_v26  ;;  %v788_v28 = vmul.f32 0.03125, %v786_v27 }
 0x746   : > { %v790_v29 = vadd.f32 1e-05, %v788_v28 }
 0x748   : > { %2317 = vrsqrt.f32 %v790_v29 }
 0x74e   : > { %v2316_v30 = vpop.eup %2315 }
 0x74f   : > { %v793_v33 = vmul.f32 %v2316_v30, %v777_v9 }
 0x751   : > { %v803_v35 = vmul.f32 %v1854_v31, %v793_v33  ;;  %v2277_v33 = vld [vmem:[%s3014_s2 + $0x90] sm:$0xff]  }
 0x752   : > { %v2318_v36 = vpop.eup %2317  ;;  %2083 = vmatpush3.bf16.msra.mxu0 %v2277_v33 }
 0x753   : > { %v813_v37 = vadd.f32 %v1856_v34, %v803_v35  ;;  %v794_v38 = vmul.f32 %v2318_v36, %v778_v13  ;;  %2084 = vmatprep.subr.bf16.mxu0 %v2455_v1  ;;  %v2279_v35 = vld [vmem:[%s3014_s2 + $0xa0] sm:$0xff]   ;;  %v2280_v36 = vld [vmem:[%s3014_s2 + $0xa8] sm:$0xff]  }
 0x755   : > { %v817_v39 = vmul.f32 %v816_v17, %v813_v37  ;;  %v804_v40 = vmul.f32 %v1854_v31, %v794_v38 }
 0x757   : > { %v819_v41 = vadd.f32 %v817_v39, %v2695_v32  ;;  %v814_v42 = vadd.f32 %v1856_v34, %v804_v40  ;;  %v2278_v34 = vld [vmem:[%s3014_s2 + $0x98] sm:$0xff]  }
 0x758   : > { %2085 = vmatpush3.bf16.msra.mxu0 %v2278_v34 }
 0x759   : > { %821 = vst.msk [vmem:[#allocation2 + $0x8] sm:$0xff] %vm365_vm1, %v819_v41  ;;  %v818_v43 = vmul.f32 %v816_v17, %v814_v42  ;;  %2086 = vmatprep.subr.bf16.mxu0 %v2455_v1  ;;  %v2281_v17 = vld [vmem:[%s3014_s2 + $0xb0] sm:$0xff]  }
 0x75b   : > { %v820_v44 = vadd.f32 %v818_v43, %v2697_v16 }
 0x75c   : > { %2087 = vmatpush3.bf16.msra.mxu0 %v2279_v35 }
 0x75d   : > { %822 = vst.msk [vmem:[#allocation2 + $0x10] sm:$0xff] %vm365_vm1, %v820_v44  ;;  %2088 = vmatprep.subr.bf16.mxu0 %v2455_v1  ;;  %v1882_v44 = vld [vmem:[%s3016_s4 + $0x2] ss:$0 sm:$0xff] }
 0x760   : > { %v2753_v46 = vld [vmem:[#allocation2 + $0x8] sm:$0xff]  ;;  %2089 = vmatpush3.bf16.msra.mxu0 %v2280_v36 }
 0x761   : > { %v823_v56 = vld [vmem:[#allocation2 + $0x4] sm:$0xff]  ;;  %2090 = vmatprep.subr.bf16.mxu0 %v2455_v1 }
 0x764   : > { %v2755_v47 = vld [vmem:[#allocation2 + $0x10] sm:$0xff]  ;;  %2091 = vmatpush3.bf16.msra.mxu0 %v2281_v17 }
 0x765   : > { %v824_v32 = vld [vmem:[#allocation2 + $0xc] sm:$0xff]  ;;  %v827_v48 = vld [vmem:[#allocation2 + $0x14] sm:$0xff]  ;;  %v2217_v49 = vpack.i.bf16 %v2755_v47, %v2753_v46  ;;  %2092 = vmatprep.subr.bf16.mxu0 %v2455_v1 }
 0x766   : > { %v2222_v50 = vpack.i.bf16 %v827_v48, %v824_v32 }
 0x767   : > { %2218 = vrot.lane.b32.xlu1 %v2217_v49, %s2457_s23 }
 0x768   : > { %2223 = vrot.lane.b32.xlu0 %v2222_v50, %s2458_s24  ;;  %v1019_v50 = vstv %s1885_s25 }
 0x7d9   : > { %v2219_v16 = vpop.permute.xlu1 %2218 }
 0x7da   : > { %v2224_v51 = vpop.permute.xlu0 %2223  ;;  %v2221_v52 = vunpack.i.h.bf16 %v2219_v16  ;;  %v2220_v53 = vunpack.i.l.bf16 %v2219_v16 }
 0x7db   : > { %v2226_v54 = vunpack.i.h.bf16 %v2224_v51  ;;  %v2225_v55 = vunpack.i.l.bf16 %v2224_v51 }
 0x7dc   : > { %v844_v57 = vsel %vm365_vm1, %v823_v56, %v2220_v53  ;;  %v845_v58 = vsel %vm365_vm1, %v824_v32, %v2221_v52  ;;  %v1884_v32 = vld [vmem:[%s3017_s5 + $0x2] ss:$0 sm:$0xff] }
 0x7dd   : > { %v846_v59 = vsel %vm440_vm2, %v844_v57, %v2225_v55  ;;  %v847_v60 = vsel %vm440_vm2, %v845_v58, %v2226_v54  ;;  %v2282_v58 = vld [vmem:[%s3014_s2 + $0xb8] sm:$0xff]  }
 0x7de   : > { %v848_v61 = vpack.c.bf16 %v847_v60, %v846_v59  ;;  %2093 = vmatpush3.bf16.msra.mxu0 %v2282_v58  ;;  %v1029_v59 = vld [vmem:[#allocation2 + $0x18] sm:$0xff]  ;;  %v1912_v58 = vld [vmem:[%s3017_s5 + $0x3] ss:$0 sm:$0xff] }
 0x7df   : > { %2114 = vmatprep.subr.bf16.mxu0 %v2455_v1 }
 0x7e0   : > { %2079 = vmatmul.mubr.msk.bf16.vlgmr.msra.gmra.mrb[4].mxu1 %vm499_vm3, %v848_v61 }
 0x7e1   : > { %2110 = vmatprep.mubr.msk.bf16.mxu1 %vm2456_vm0, %v2455_v1 }
 0x8b3   : > { %v943_v63 = vpop.f32.mrb[4].mxu1 }
 0x8b4   : > { %v944_v0 = vadd.f32 %v1871_v62, %v943_v63  ;;  %v2080_v2 = vpop.f32.mrb[5].mxu1  ;;  %v1026_v63 = vld [vmem:[#allocation2] sm:$0xff] }
 0x8b5   : > { %v946_v3 = vpop.f32.mrb[6].mxu1 }
 0x8b6   : > { %v1879_v4 = vmul.f32 -1.442695, %v944_v0  ;;  %v947_v5 = vadd.f32 %v1871_v62, %v946_v3  ;;  %v2081_v6 = vpop.f32.mrb[7].mxu1 }
 0x8b8   : > { %2319 = vpow2.f32 %v1879_v4  ;;  %v1880_v7 = vmul.f32 -1.442695, %v947_v5 }
 0x8ba   : > { %2321 = vpow2.f32 %v1880_v7 }
 0x8c2   : > { %v2320_v8 = vpop.eup %2319 }
 0x8c3   : > { %v956_v9 = vadd.f32 1.0, %v2320_v8 }
 0x8c4   : > { %v2322_v10 = vpop.eup %2321 }
 0x8c5   : > { %2323 = vrcp.f32 %v956_v9  ;;  %v957_v11 = vadd.f32 1.0, %v2322_v10 }
 0x8c7   : > { %2325 = vrcp.f32 %v957_v11  ;;  %v1899_v11 = vld [vmem:[%s3015_s3 + $0x3] ss:$0 sm:$0xff] }
 0x8cf   : > { %v2324_v12 = vpop.eup %2323 }
 0x8d0   : > { %964 = vrot.lane.b32.xlu1 %v2324_v12, %s2459_s27 }
 0x8d1   : > { %v2326_v13 = vpop.eup %2325 }
 0x8d4   : > { %966 = vrot.lane.b32.xlu1 %v2326_v13, %s2459_s27 }
 0x942   : > { %v965_v14 = vpop.permute.xlu1 %964 }
 0x943   : > { %v970_v15 = vmul.f32 %v965_v14, %v944_v0 }
 0x945   : > { %v972_v18 = vsel %vm365_vm1, %v970_v15, 0.0 }
 0x946   : > { %973 = vadd.xlane.f32.xlu0 %v972_v18  ;;  %v967_v19 = vpop.permute.xlu1 %966 }
 0x947   : > { %v971_v20 = vmul.f32 %v967_v19, %v947_v5 }
 0x949   : > { %v975_v21 = vsel %vm365_vm1, %v971_v20, 0.0 }
 0x94a   : > { %976 = vadd.xlane.f32.xlu1 %v975_v21 }
 0x9d3   : > { %v974_v22 = vpop.xlane.xlu0 %973 }
 0x9d4   : > { %v978_v23 = vmul.f32 0.03125, %v974_v22 }
 0x9d6   : > { %v980_v24 = vsub.f32 %v970_v15, %v978_v23 }
 0x9d7   : > { %v977_v25 = vpop.xlane.xlu1 %976 }
 0x9d8   : > { %v979_v26 = vmul.f32 0.03125, %v977_v25  ;;  %v982_v27 = vmul.f32 %v980_v24, %v980_v24 }
 0x9da   : > { %v981_v28 = vsub.f32 %v971_v20, %v979_v26  ;;  %v984_v29 = vsel %vm365_vm1, %v982_v27, 0.0 }
 0x9db   : > { %985 = vadd.xlane.f32.xlu0 %v984_v29 }
 0x9dc   : > { %v983_v30 = vmul.f32 %v981_v28, %v981_v28 }
 0x9de   : > { %v987_v31 = vsel %vm365_vm1, %v983_v30, 0.0 }
 0x9df   : > { %988 = vadd.xlane.f32.xlu0 %v987_v31 }
 0xa68   : > { %v986_v37 = vpop.xlane.xlu0 %985 }
 0xa69   : > { %v990_v38 = vmul.f32 0.03125, %v986_v37 }
 0xa6b   : > { %v992_v39 = vadd.f32 1e-05, %v990_v38 }
 0xa6c   : > { %v989_v40 = vpop.xlane.xlu0 %988 }
 0xa6d   : > { %2327 = vrsqrt.f32 %v992_v39  ;;  %v991_v41 = vmul.f32 0.03125, %v989_v40 }
 0xa6f   : > { %v993_v42 = vadd.f32 1e-05, %v991_v41 }
 0xa71   : > { %2329 = vrsqrt.f32 %v993_v42 }
 0xa77   : > { %v2328_v43 = vpop.eup %2327 }
 0xa78   : > { %v996_v45 = vmul.f32 %v2328_v43, %v980_v24 }
 0xa7a   : > { %v1006_v48 = vmul.f32 %v1882_v44, %v996_v45  ;;  %v2284_v45 = vld [vmem:[%s3014_s2 + $0xc8] sm:$0xff]  }
 0xa7b   : > { %v2330_v49 = vpop.eup %2329 }
 0xa7c   : > { %v1016_v16 = vadd.f32 %v1884_v32, %v1006_v48  ;;  %v997_v51 = vmul.f32 %v2330_v49, %v981_v28  ;;  %v2286_v48 = vld [vmem:[%s3014_s2 + $0xd8] sm:$0xff]   ;;  %v2287_v49 = vld [vmem:[%s3014_s2 + $0xe0] sm:$0xff]  }
 0xa7e   : > { %v1020_v52 = vmul.f32 %v1019_v50, %v1016_v16  ;;  %v1007_v53 = vmul.f32 %v1882_v44, %v997_v51  ;;  %v2283_v44 = vld [vmem:[%s3014_s2 + $0xc0] sm:$0xff]  }
 0xa7f   : > { %2099 = vmatpush3.bf16.msra.mxu1 %v2283_v44 }
 0xa80   : > { %v1022_v54 = vadd.f32 %v1020_v52, %v2753_v46  ;;  %v1017_v55 = vadd.f32 %v1884_v32, %v1007_v53  ;;  %2100 = vmatprep.subr.bf16.mxu1 %v2455_v1  ;;  %v2285_v32 = vld [vmem:[%s3014_s2 + $0xd0] sm:$0xff]  }
 0xa82   : > { %1024 = vst.msk [vmem:[#allocation2 + $0x8] sm:$0xff] %vm365_vm1, %v1022_v54  ;;  %v1021_v56 = vmul.f32 %v1019_v50, %v1017_v55 }
 0xa83   : > { %2101 = vmatpush3.bf16.msra.mxu1 %v2284_v45 }
 0xa84   : > { %v1023_v57 = vadd.f32 %v1021_v56, %v2755_v47  ;;  %2102 = vmatprep.subr.bf16.mxu1 %v2455_v1  ;;  %v1910_v56 = vld [vmem:[%s3016_s4 + $0x3] ss:$0 sm:$0xff] }
 0xa86   : > { %1025 = vst.msk [vmem:[#allocation2 + $0x10] sm:$0xff] %vm365_vm1, %v1023_v57 }
 0xa87   : > { %2103 = vmatpush3.bf16.msra.mxu1 %v2285_v32 }
 0xa88   : > { %2104 = vmatprep.subr.bf16.mxu1 %v2455_v1 }
 0xa89   : > { %v2813_v61 = vld [vmem:[#allocation2 + $0x8] sm:$0xff] }
 0xa8b   : > { %2105 = vmatpush3.bf16.msra.mxu1 %v2286_v48 }
 0xa8c   : > { %2106 = vmatprep.subr.bf16.mxu1 %v2455_v1 }
 0xa8d   : > { %v2811_v60 = vld [vmem:[#allocation2 + $0x10] sm:$0xff] }
 0xa8e   : > { %v2232_v46 = vpack.i.bf16 %v1029_v59, %v2811_v60  ;;  %v2227_v62 = vpack.i.bf16 %v2811_v60, %v2813_v61 }
 0xa8f   : > { %2107 = vmatpush3.bf16.msra.mxu1 %v2287_v49 }
 0xa90   : > { %2233 = vrot.lane.b32.xlu0 %v2232_v46, %s2458_s24  ;;  %2228 = vrot.lane.b32.xlu1 %v2227_v62, %s2457_s23  ;;  %v1220_v62 = vstv %s1913_s22 }
 0xa91   : > { %2108 = vmatprep.subr.bf16.mxu1 %v2455_v1 }
 0xb02   : > { %v2234_v47 = vpop.permute.xlu0 %2233  ;;  %v2229_v0 = vpop.permute.xlu1 %2228 }
 0xb03   : > { %v2236_v2 = vunpack.i.h.bf16 %v2234_v47  ;;  %v2235_v3 = vunpack.i.l.bf16 %v2234_v47  ;;  %v2231_v4 = vunpack.i.h.bf16 %v2229_v0  ;;  %v2230_v5 = vunpack.i.l.bf16 %v2229_v0 }
 0xb05   : > { %v1046_v6 = vsel %vm365_vm1, %v2813_v61, %v2231_v4  ;;  %v1045_v7 = vsel %vm365_vm1, %v1026_v63, %v2230_v5 }
 0xb06   : > { %v1048_v8 = vsel %vm440_vm2, %v1046_v6, %v2236_v2  ;;  %v1047_v9 = vsel %vm440_vm2, %v1045_v7, %v2235_v3  ;;  %v2288_v7 = vld [vmem:[%s3014_s2 + $0xe8] sm:$0xff]  }
 0xb07   : > { %v1049_v10 = vpack.c.bf16 %v1048_v8, %v1047_v9  ;;  %2109 = vmatpush3.bf16.msra.mxu1 %v2288_v7  ;;  %v1938_v7 = vld [vmem:[%s3016_s4 + $0x4] ss:$0 sm:$0xff] }
 0xb09   : > { %2095 = vmatmul.mubr.msk.bf16.vlgmr.msra.gmra.mrb[8].mxu0 %vm499_vm3, %v1049_v10 }
 0xb0a   : > { %2126 = vmatprep.mubr.msk.bf16.mxu0 %vm2456_vm0, %v2455_v1 }
 0xbdc   : > { %v1144_v12 = vpop.f32.mrb[8].mxu0 }
 0xbdd   : > { %v1145_v13 = vadd.f32 %v1899_v11, %v1144_v12  ;;  %v2096_v14 = vpop.f32.mrb[9].mxu0 }
 0xbde   : > { %v1147_v15 = vpop.f32.mrb[10].mxu0 }
 0xbdf   : > { %v1907_v18 = vmul.f32 -1.442695, %v1145_v13  ;;  %v1148_v19 = vadd.f32 %v1899_v11, %v1147_v15  ;;  %v2097_v20 = vpop.f32.mrb[11].mxu0 }
 0xbe1   : > { %2331 = vpow2.f32 %v1907_v18  ;;  %v1908_v21 = vmul.f32 -1.442695, %v1148_v19 }
 0xbe3   : > { %2333 = vpow2.f32 %v1908_v21 }
 0xbeb   : > { %v2332_v22 = vpop.eup %2331 }
 0xbec   : > { %v1157_v23 = vadd.f32 1.0, %v2332_v22 }
 0xbed   : > { %v2334_v24 = vpop.eup %2333 }
 0xbee   : > { %2335 = vrcp.f32 %v1157_v23  ;;  %v1158_v25 = vadd.f32 1.0, %v2334_v24 }
 0xbf0   : > { %2337 = vrcp.f32 %v1158_v25 }
 0xbf8   : > { %v2336_v26 = vpop.eup %2335 }
 0xbf9   : > { %1165 = vrot.lane.b32.xlu1 %v2336_v26, %s2459_s27 }
 0xbfa   : > { %v2338_v27 = vpop.eup %2337 }
 0xbfd   : > { %1167 = vrot.lane.b32.xlu1 %v2338_v27, %s2459_s27  ;;  %v1927_v27 = vld [vmem:[%s3015_s3 + $0x4] ss:$0 sm:$0xff] }
 0xc6b   : > { %v1166_v28 = vpop.permute.xlu1 %1165 }
 0xc6c   : > { %v1171_v29 = vmul.f32 %v1166_v28, %v1145_v13 }
 0xc6e   : > { %v1173_v30 = vsel %vm365_vm1, %v1171_v29, 0.0 }
 0xc6f   : > { %1174 = vadd.xlane.f32.xlu0 %v1173_v30  ;;  %v1168_v31 = vpop.permute.xlu1 %1167 }
 0xc70   : > { %v1172_v33 = vmul.f32 %v1168_v31, %v1148_v19 }
 0xc72   : > { %v1176_v34 = vsel %vm365_vm1, %v1172_v33, 0.0 }
 0xc73   : > { %1177 = vadd.xlane.f32.xlu1 %v1176_v34 }
 0xcfc   : > { %v1175_v35 = vpop.xlane.xlu0 %1174 }
 0xcfd   : > { %v1179_v36 = vmul.f32 0.03125, %v1175_v35 }
 0xcff   : > { %v1181_v17 = vsub.f32 %v1171_v29, %v1179_v36 }
 0xd00   : > { %v1178_v37 = vpop.xlane.xlu1 %1177 }
 0xd01   : > { %v1180_v38 = vmul.f32 0.03125, %v1178_v37  ;;  %v1183_v39 = vmul.f32 %v1181_v17, %v1181_v17 }
 0xd03   : > { %v1182_v40 = vsub.f32 %v1172_v33, %v1180_v38  ;;  %v1185_v41 = vsel %vm365_vm1, %v1183_v39, 0.0 }
 0xd04   : > { %1186 = vadd.xlane.f32.xlu0 %v1185_v41 }
 0xd05   : > { %v1184_v42 = vmul.f32 %v1182_v40, %v1182_v40 }
 0xd07   : > { %v1188_v43 = vsel %vm365_vm1, %v1184_v42, 0.0 }
 0xd08   : > { %1189 = vadd.xlane.f32.xlu0 %v1188_v43 }
 0xd91   : > { %v1187_v50 = vpop.xlane.xlu0 %1186 }
 0xd92   : > { %v1191_v16 = vmul.f32 0.03125, %v1187_v50 }
 0xd94   : > { %v1193_v51 = vadd.f32 1e-05, %v1191_v16 }
 0xd95   : > { %v1190_v52 = vpop.xlane.xlu0 %1189 }
 0xd96   : > { %2339 = vrsqrt.f32 %v1193_v51  ;;  %v1192_v53 = vmul.f32 0.03125, %v1190_v52 }
 0xd98   : > { %v1194_v54 = vadd.f32 1e-05, %v1192_v53 }
 0xd9a   : > { %2341 = vrsqrt.f32 %v1194_v54 }
 0xda0   : > { %v2340_v55 = vpop.eup %2339 }
 0xda1   : > { %v1197_v57 = vmul.f32 %v2340_v55, %v1181_v17 }
 0xda3   : > { %v1207_v59 = vmul.f32 %v1910_v56, %v1197_v57 }
 0xda4   : > { %v2342_v46 = vpop.eup %2341 }
 0xda5   : > { %v1217_v47 = vadd.f32 %v1912_v58, %v1207_v59  ;;  %v1198_v63 = vmul.f32 %v2342_v46, %v1182_v40  ;;  %v2290_v59 = vld [vmem:[%s3014_s2 + $0xf8] sm:$0xff]   ;;  %v2291_v46 = vld [vmem:[%s3014_s2 + $0x100] sm:$0xff]  }
 0xda7   : > { %v1221_v0 = vmul.f32 %v1220_v62, %v1217_v47  ;;  %v1208_v2 = vmul.f32 %v1910_v56, %v1198_v63  ;;  %v2293_v47 = vld [vmem:[%s3014_s2 + $0x110] sm:$0xff]  }
 0xda9   : > { %v1223_v3 = vadd.f32 %v1221_v0, %v2813_v61  ;;  %v1218_v4 = vadd.f32 %v1912_v58, %v1208_v2  ;;  %v2289_v58 = vld [vmem:[%s3014_s2 + $0xf0] sm:$0xff]  }
 0xdaa   : > { %2115 = vmatpush3.bf16.msra.mxu0 %v2289_v58 }
 0xdab   : > { %1225 = vst.msk [vmem:[#allocation2 + $0x8] sm:$0xff] %vm365_vm1, %v1223_v3  ;;  %v1222_v5 = vmul.f32 %v1220_v62, %v1218_v4  ;;  %2116 = vmatprep.subr.bf16.mxu0 %v2455_v1  ;;  %v2292_v62 = vld [vmem:[%s3014_s2 + $0x108] sm:$0xff]  }
 0xdad   : > { %v1224_v6 = vadd.f32 %v1222_v5, %v2811_v60 }
 0xdae   : > { %2117 = vmatpush3.bf16.msra.mxu0 %v2290_v59 }
 0xdaf   : > { %1226 = vst.msk [vmem:[#allocation2 + $0x10] sm:$0xff] %vm365_vm1, %v1224_v6  ;;  %2118 = vmatprep.subr.bf16.mxu0 %v2455_v1 }
 0xdb2   : > { %v2870_v8 = vld [vmem:[#allocation2 + $0x8] sm:$0xff]  ;;  %2119 = vmatpush3.bf16.msra.mxu0 %v2291_v46 }
 0xdb3   : > { %v1227_v20 = vld [vmem:[#allocation2 + $0x7] sm:$0xff]  ;;  %2120 = vmatprep.subr.bf16.mxu0 %v2455_v1 }
 0xdb6   : > { %v1231_v9 = vld [vmem:[#allocation2 + $0x9] sm:$0xff]  ;;  %v1232_v10 = vld [vmem:[#allocation2 + $0x11] sm:$0xff]  ;;  %2121 = vmatpush3.bf16.msra.mxu0 %v2292_v62 }
 0xdb7   : > { %v2872_v11 = vld [vmem:[#allocation2 + $0x10] sm:$0xff]  ;;  %v2242_v61 = vpack.i.bf16 %v1232_v10, %v1231_v9  ;;  %2122 = vmatprep.subr.bf16.mxu0 %v2455_v1  ;;  %v1940_v10 = vld [vmem:[%s3017_s5 + $0x4] ss:$0 sm:$0xff] }
 0xdb8   : > { %v2237_v12 = vpack.i.bf16 %v2872_v11, %v2870_v8  ;;  %v1228_v21 = vld [vmem:[#allocation2 + $0xf] sm:$0xff] }
 0xdb9   : > { %2243 = vrot.lane.b32.xlu0 %v2242_v61, %s2458_s24 }
 0xdba   : > { %2238 = vrot.lane.b32.xlu1 %v2237_v12, %s2457_s23  ;;  %2123 = vmatpush3.bf16.msra.mxu0 %v2293_v47  ;;  %v1424_v12 = vstv %s1941_s18  ;;  %s2390_s18 = sshll.u32 %s2461_s8, 4  ;;  %s2391_s18 = int_to_ptr.vmem [resolvable:$false] %s2390_s18 }
 0xdbb   : > { %2124 = vmatprep.subr.bf16.mxu0 %v2455_v1  ;;  %s2392_s22 = scalar_lea.vmem %s2391_s18, 32 }
 0xe2b   : > { %v2244_v60 = vpop.permute.xlu0 %2243 }
 0xe2c   : > { %v2239_v13 = vpop.permute.xlu1 %2238  ;;  %v2246_v14 = vunpack.i.h.bf16 %v2244_v60  ;;  %v2245_v15 = vunpack.i.l.bf16 %v2244_v60 }
 0xe2d   : > { %v2241_v18 = vunpack.i.h.bf16 %v2239_v13  ;;  %v2240_v19 = vunpack.i.l.bf16 %v2239_v13 }
 0xe2f   : > { %v1249_v22 = vsel %vm365_vm1, %v1227_v20, %v2240_v19  ;;  %v1250_v23 = vsel %vm365_vm1, %v1228_v21, %v2241_v18 }
 0xe30   : > { %v1251_v24 = vsel %vm440_vm2, %v1249_v22, %v2245_v15  ;;  %v1252_v25 = vsel %vm440_vm2, %v1250_v23, %v2246_v14  ;;  %v2294_v22 = vld [vmem:[%s3014_s2 + $0x118] sm:$0xff]  }
 0xe31   : > { %v1253_v26 = vpack.c.bf16 %v1252_v25, %v1251_v24  ;;  %2125 = vmatpush3.bf16.msra.mxu0 %v2294_v22 }
 0xe33   : > { %2111 = vmatmul.mubr.msk.bf16.vlgmr.msra.gmra.mrb[8].mxu1 %vm499_vm3, %v1253_v26 }
 0xe34   : > { %2134 = vmatprep.mubr.msk.f32.mxu1 %vm2456_vm0, %v2455_v1 }
 0xf06   : > { %v1348_v28 = vpop.f32.mrb[8].mxu1 }
 0xf07   : > { %v1349_v29 = vadd.f32 %v1927_v27, %v1348_v28  ;;  %v2112_v30 = vpop.f32.mrb[9].mxu1 }
 0xf08   : > { %v1351_v31 = vpop.f32.mrb[10].mxu1 }
 0xf09   : > { %v1935_v33 = vmul.f32 -1.442695, %v1349_v29  ;;  %v1352_v34 = vadd.f32 %v1927_v27, %v1351_v31  ;;  %v2113_v35 = vpop.f32.mrb[11].mxu1 }
 0xf0b   : > { %2343 = vpow2.f32 %v1935_v33  ;;  %v1936_v36 = vmul.f32 -1.442695, %v1352_v34 }
 0xf0d   : > { %2345 = vpow2.f32 %v1936_v36 }
 0xf15   : > { %v2344_v17 = vpop.eup %2343 }
 0xf16   : > { %v1361_v37 = vadd.f32 1.0, %v2344_v17 }
 0xf17   : > { %v2346_v38 = vpop.eup %2345 }
 0xf18   : > { %2347 = vrcp.f32 %v1361_v37  ;;  %v1362_v39 = vadd.f32 1.0, %v2346_v38 }
 0xf1a   : > { %2349 = vrcp.f32 %v1362_v39 }
 0xf22   : > { %v2348_v40 = vpop.eup %2347 }
 0xf23   : > { %1369 = vrot.lane.b32.xlu1 %v2348_v40, %s2459_s27  ;;  %v1955_v40 = vld [vmem:[%s3015_s3 + $0x5] ss:$0 sm:$0xff] }
 0xf24   : > { %v2350_v41 = vpop.eup %2349 }
 0xf27   : > { %1371 = vrot.lane.b32.xlu1 %v2350_v41, %s2459_s27 }
 0xf95   : > { %v1370_v42 = vpop.permute.xlu1 %1369 }
 0xf96   : > { %v1375_v43 = vmul.f32 %v1370_v42, %v1349_v29 }
 0xf98   : > { %v1377_v44 = vsel %vm365_vm1, %v1375_v43, 0.0 }
 0xf99   : > { %1378 = vadd.xlane.f32.xlu0 %v1377_v44  ;;  %v1372_v45 = vpop.permute.xlu1 %1371 }
 0xf9a   : > { %v1376_v32 = vmul.f32 %v1372_v45, %v1352_v34 }
 0xf9c   : > { %v1380_v48 = vsel %vm365_vm1, %v1376_v32, 0.0 }
 0xf9d   : > { %1381 = vadd.xlane.f32.xlu1 %v1380_v48 }
0x1026   : > { %v1379_v49 = vpop.xlane.xlu0 %1378 }
0x1027   : > { %v1383_v50 = vmul.f32 0.03125, %v1379_v49 }
0x1029   : > { %v1385_v16 = vsub.f32 %v1375_v43, %v1383_v50 }
0x102a   : > { %v1382_v51 = vpop.xlane.xlu1 %1381 }
0x102b   : > { %v1384_v52 = vmul.f32 0.03125, %v1382_v51  ;;  %v1387_v53 = vmul.f32 %v1385_v16, %v1385_v16 }
0x102d   : > { %v1386_v54 = vsub.f32 %v1376_v32, %v1384_v52  ;;  %v1389_v55 = vsel %vm365_vm1, %v1387_v53, 0.0 }
0x102e   : > { %1390 = vadd.xlane.f32.xlu0 %v1389_v55 }
0x102f   : > { %v1388_v56 = vmul.f32 %v1386_v54, %v1386_v54 }
0x1031   : > { %v1392_v57 = vsel %vm365_vm1, %v1388_v56, 0.0 }
0x1032   : > { %1393 = vadd.xlane.f32.xlu0 %v1392_v57 }
0x10bb   : > { %v1391_v63 = vpop.xlane.xlu0 %1390 }
0x10bc   : > { %v1395_v0 = vmul.f32 0.03125, %v1391_v63 }
0x10be   : > { %v1397_v2 = vadd.f32 1e-05, %v1395_v0 }
0x10bf   : > { %v1394_v3 = vpop.xlane.xlu0 %1393 }
0x10c0   : > { %2351 = vrsqrt.f32 %v1397_v2  ;;  %v1396_v4 = vmul.f32 0.03125, %v1394_v3 }
0x10c2   : > { %v1398_v5 = vadd.f32 1e-05, %v1396_v4 }
0x10c4   : > { %2353 = vrsqrt.f32 %v1398_v5 }
0x10ca   : > { %v2352_v6 = vpop.eup %2351 }
0x10cb   : > { %v1401_v9 = vmul.f32 %v2352_v6, %v1385_v16 }
0x10cd   : > { %v1411_v1 = vmul.f32 %v1938_v7, %v1401_v9  ;;  %v2460_v9 = vmov 0.0|0.0  }
0x10ce   : > { %v2354_v61 = vpop.eup %2353  ;;  %2137 = vmatprep.subr.bf16.mxu1 %v2460_v9 }
0x10cf   : > { %v1421_v60 = vadd.f32 %v1940_v10, %v1411_v1  ;;  %v1402_v13 = vmul.f32 %v2354_v61, %v1386_v54 }
0x10d1   : > { %v1425_v14 = vmul.f32 %v1424_v12, %v1421_v60  ;;  %v1412_v15 = vmul.f32 %v1938_v7, %v1402_v13 }
0x10d3   : > { %v1427_v18 = vadd.f32 %v1425_v14, %v2870_v8  ;;  %v1422_v19 = vadd.f32 %v1940_v10, %v1412_v15  ;;  %v1966_v15 = vld [vmem:[%s3016_s4 + $0x5] ss:$0 sm:$0xff] }
0x10d5   : > { %1429 = vst.msk [vmem:[#allocation2 + $0x8] sm:$0xff] %vm365_vm1, %v1427_v18  ;;  %v1426_v20 = vmul.f32 %v1424_v12, %v1422_v19  ;;  %v1968_v19 = vld [vmem:[%s3017_s5 + $0x5] ss:$0 sm:$0xff] }
0x10d7   : > { %v1428_v21 = vadd.f32 %v1426_v20, %v2872_v11 }
0x10d9   : > { %1430 = vst.msk [vmem:[#allocation2 + $0x10] sm:$0xff] %vm365_vm1, %v1428_v21 }
0x10dc   : > { %v2927_v23 = vld [vmem:[#allocation2 + $0x8] sm:$0xff] }
0x10dd   : > { %v1431_v34 = vld [vmem:[#allocation2 + $0x7] sm:$0xff] }
0x10e0   : > { %v1435_v24 = vld [vmem:[#allocation2 + $0x9] sm:$0xff]  ;;  %v1436_v25 = vld [vmem:[#allocation2 + $0x11] sm:$0xff] }
0x10e1   : > { %v2929_v26 = vld [vmem:[#allocation2 + $0x10] sm:$0xff]  ;;  %v2252_v8 = vpack.i.bf16 %v1436_v25, %v1435_v24 }
0x10e2   : > { %v2247_v27 = vpack.i.bf16 %v2929_v26, %v2927_v23  ;;  %v1432_v35 = vld [vmem:[#allocation2 + $0xf] sm:$0xff] }
0x10e3   : > { %2253 = vrot.lane.b32.xlu0 %v2252_v8, %s2458_s24 }
0x10e4   : > { %2248 = vrot.lane.b32.xlu1 %v2247_v27, %s2457_s23  ;;  %s1740_s23 = sshll.u32 %s339_s30, 4  ;;  %s2972_s23 = int_to_ptr.vmem [resolvable:$true] %s1740_s23 }
0x10e5   : > { %s2386_s17 = scalar_lea.vmem %s2972_s23, 16  ;;  %p2393_p13 = scmp.lt.s32.totalorder %s2972_s23, %s2391_s18 }
0x10e6   : > { %p2387_p10 = scmp.ne.s32.totalorder %s2972_s23, %s2386_s17  ;;  %p2394_p0 = scmp.lt.s32.totalorder %s2392_s22, %s2386_s17 }
0x10e8   : > { %p2388_p11 = pnand %p2387_p10, %p2553_p5  ;;  %p2395_p1 = por %p2394_p0, %p2393_p13 }
0x10ea   : > { %p2389_p12 = pneg %p2388_p11 }
0x10ec   : > { %p2396_p2 = pnand %p2395_p1, %p2389_p12 }
0x1155   : > { %v2254_v11 = vpop.permute.xlu0 %2253 }
0x1156   : > { %v2249_v28 = vpop.permute.xlu1 %2248  ;;  %v2256_v29 = vunpack.i.h.bf16 %v2254_v11  ;;  %v2255_v30 = vunpack.i.l.bf16 %v2254_v11 }
0x1157   : > { %v2251_v31 = vunpack.i.h.bf16 %v2249_v28  ;;  %v2250_v33 = vunpack.i.l.bf16 %v2249_v28 }
0x1159   : > { %v1453_v36 = vsel %vm365_vm1, %v1431_v34, %v2250_v33  ;;  %v1454_v17 = vsel %vm365_vm1, %v1432_v35, %v2251_v31  ;;  %v1639_v35 = vstv %s1638_s26 }
0x115a   : > { %v1455_v37 = vsel %vm440_vm2, %v1453_v36, %v2255_v30  ;;  %v1456_v38 = vsel %vm440_vm2, %v1454_v17, %v2256_v29 }
0x115b   : > { %v1457_v39 = vpack.c.bf16 %v1456_v38, %v1455_v37 }
0x115d   : > { %2127 = vmatmul.mubr.msk.bf16.vlgmr.msra.gmra.mrb[12].mxu0 %vm499_vm3, %v1457_v39 }
0x1230   : > { %v1552_v41 = vpop.f32.mrb[12].mxu0 }
0x1231   : > { %v1553_v42 = vadd.f32 %v1955_v40, %v1552_v41  ;;  %v2128_v43 = vpop.f32.mrb[13].mxu0 }
0x1232   : > { %v1555_v44 = vpop.f32.mrb[14].mxu0 }
0x1233   : > { %v1963_v45 = vmul.f32 -1.442695, %v1553_v42  ;;  %v1556_v32 = vadd.f32 %v1955_v40, %v1555_v44  ;;  %v2129_v48 = vpop.f32.mrb[15].mxu0 }
0x1235   : > { %2355 = vpow2.f32 %v1963_v45  ;;  %v1964_v49 = vmul.f32 -1.442695, %v1556_v32 }
0x1237   : > { %2357 = vpow2.f32 %v1964_v49 }
0x123f   : > { %v2356_v50 = vpop.eup %2355 }
0x1240   : > { %v1565_v16 = vadd.f32 1.0, %v2356_v50 }
0x1241   : > { %v2358_v51 = vpop.eup %2357 }
0x1242   : > { %2359 = vrcp.f32 %v1565_v16  ;;  %v1566_v52 = vadd.f32 1.0, %v2358_v51 }
0x1244   : > { %2361 = vrcp.f32 %v1566_v52 }
0x124c   : > { %v2360_v53 = vpop.eup %2359 }
0x124d   : > { %1573 = vrot.lane.b32.xlu1 %v2360_v53, %s2459_s27 }
0x124e   : > { %v2362_v54 = vpop.eup %2361 }
0x1251   : > { %1575 = vrot.lane.b32.xlu1 %v2362_v54, %s2459_s27  ;;  %s1969_s27 = sld [smem:[#allocation4 + $0x5]] }
0x1257   : > { %v1628_v22 = vstv %s1969_s27 }
0x12bf   : > { %v1574_v55 = vpop.permute.xlu1 %1573 }
0x12c0   : > { %v1579_v56 = vmul.f32 %v1574_v55, %v1553_v42 }
0x12c2   : > { %v1581_v57 = vsel %vm365_vm1, %v1579_v56, 0.0 }
0x12c3   : > { %1582 = vadd.xlane.f32.xlu0 %v1581_v57  ;;  %v1576_v58 = vpop.permute.xlu1 %1575 }
0x12c4   : > { %v1580_v59 = vmul.f32 %v1576_v58, %v1556_v32 }
0x12c6   : > { %v1584_v46 = vsel %vm365_vm1, %v1580_v59, 0.0 }
0x12c7   : > { %1585 = vadd.xlane.f32.xlu1 %v1584_v46 }
0x1350   : > { %v1583_v62 = vpop.xlane.xlu0 %1582 }
0x1351   : > { %v1587_v47 = vmul.f32 0.03125, %v1583_v62 }
0x1353   : > { %v1589_v63 = vsub.f32 %v1579_v56, %v1587_v47 }
0x1354   : > { %v1586_v0 = vpop.xlane.xlu1 %1585 }
0x1355   : > { %v1588_v2 = vmul.f32 0.03125, %v1586_v0  ;;  %v1591_v3 = vmul.f32 %v1589_v63, %v1589_v63 }
0x1357   : > { %v1590_v4 = vsub.f32 %v1580_v59, %v1588_v2  ;;  %v1593_v5 = vsel %vm365_vm1, %v1591_v3, 0.0 }
0x1358   : > { %1594 = vadd.xlane.f32.xlu0 %v1593_v5 }
0x1359   : > { %v1592_v6 = vmul.f32 %v1590_v4, %v1590_v4 }
0x135b   : > { %v1596_v7 = vsel %vm365_vm1, %v1592_v6, 0.0 }
0x135c   : > { %1597 = vadd.xlane.f32.xlu0 %v1596_v7 }
0x13e5   : > { %v1595_v10 = vpop.xlane.xlu0 %1594 }
0x13e6   : > { %v1599_v1 = vmul.f32 0.03125, %v1595_v10 }
0x13e8   : > { %v1601_v61 = vadd.f32 1e-05, %v1599_v1 }
0x13e9   : > { %v1598_v12 = vpop.xlane.xlu0 %1597 }
0x13ea   : > { %2363 = vrsqrt.f32 %v1601_v61  ;;  %v1600_v60 = vmul.f32 0.03125, %v1598_v12 }
0x13ec   : > { %v1602_v13 = vadd.f32 1e-05, %v1600_v60 }
0x13ee   : > { %2365 = vrsqrt.f32 %v1602_v13 }
0x13f4   : > { %v2364_v14 = vpop.eup %2363 }
0x13f5   : > { %v1605_v18 = vmul.f32 %v2364_v14, %v1589_v63 }
0x13f7   : > { %v1615_v20 = vmul.f32 %v1966_v15, %v1605_v18 }
0x13f8   : > { %v2366_v21 = vpop.eup %2365 }
0x13f9   : > { %v1625_v24 = vadd.f32 %v1968_v19, %v1615_v20  ;;  %v1606_v25 = vmul.f32 %v2366_v21, %v1590_v4 }
0x13fb   : > { %v1629_v8 = vmul.f32 %v1628_v22, %v1625_v24  ;;  %v1616_v27 = vmul.f32 %v1966_v15, %v1606_v25 }
0x13fd   : > { %v1631_v11 = vadd.f32 %v1629_v8, %v2927_v23  ;;  %v1626_v28 = vadd.f32 %v1968_v19, %v1616_v27  ;;  %v1637_v23 = vld [vmem:[%s3019_s7] sm:$0x1] }
0x13ff   : > { %1633 = vst.msk [vmem:[#allocation2 + $0x8] sm:$0xff] %vm365_vm1, %v1631_v11  ;;  %v1630_v29 = vmul.f32 %v1628_v22, %v1626_v28 }
0x1401   : > { %v1632_v30 = vadd.f32 %v1630_v29, %v2929_v26 }
0x1403   : > { %1634 = vst.msk [vmem:[#allocation2 + $0x10] sm:$0xff] %vm365_vm1, %v1632_v30 }
0x1406   : > { %v1635_v31 = vld [vmem:[#allocation2 + $0x8] sm:$0xff] }
0x140a   : > { %v1636_v33 = vld [vmem:[#allocation2 + $0x10] sm:$0xff] }
0x140b   : > { %v2138_v34 = vpack.c.bf16 %v1636_v33, %v1635_v31 }
0x140d   : > { %2140 = vmatpush3.bf16.xpose.msk.msra.mxu1 %vm2139_vm4, %v2138_v34 }
0x1414   : > { %2135 = vmatmul.mubr.msk.f32.vlgmr.msra.gmra.mrb[12].mxu1 %vm365_vm1, %v1637_v23 }
0x14e7   : > { %v1715_v26 = vpop.f32.mrb[12].mxu1 }
0x14e8   : > { %v1716_v36 = vadd.f32 %v1715_v26, %v1639_v35  ;;  %v2136_v17 = vpop.f32.mrb[13].mxu1 }
0x14ea   : > { %v1973_v37 = vmul.f32 -1.442695, %v1716_v36 }
0x14ec   : > { %2367 = vpow2.f32 %v1973_v37 }
0x14f6   : > { %v2368_v38 = vpop.eup %2367 }
0x14f7   : > { %v1722_v39 = vadd.f32 1.0, %v2368_v38 }
0x14f9   : > { %2369 = vrcp.f32 %v1722_v39 }
0x1503   : > { %v2370_v40 = vpop.eup %2369 }
0x1504   : > { %1726 = vst.msk [vmem:[%s339_s30] sm:$0x1] %vm1725_vm5, %v2370_v40 }
0x1505   : > { %2399 = shalt.err (!%p2396_p2)
}
0x1506   : > { %s2400_s25 = scalar_lea.hbm %s2970_s10, 16  ;;  %s2404_s29 = scalar_lea.hbm %s3021_s9, 32 }
0x1507   : > { %p2401_p3 = scmp.ne.s32.totalorder %s2970_s10, %s2400_s25  ;;  %p2405_p8 = scmp.lt.u32.totalorder %s2970_s10, %s3021_s9 }
0x1508   : > { %p2406_p9 = scmp.lt.u32.totalorder %s2404_s29, %s2400_s25  ;;  %p2408_p11 = scmp.lt.u32.totalorder %s2400_s25, %s2970_s10 }
0x1509   : > { %p2402_p4 = pnand %p2401_p3, %p2553_p5 }
0x150a   : > { %p2407_p10 = por %p2406_p9, %p2405_p8 }
0x150b   : > { %p2403_p7 = pneg %p2402_p4 }
0x150c   : > { %p2409_p12 = por %p2408_p11, %p2407_p10 }
0x150e   : > { %p2410_p13 = pnand %p2409_p12, %p2403_p7 }
0x1510   : > { %2413 = shalt.err (!%p2410_p13)
}
0x1511   : > { %2145 = dma.vmem_to_hbm [thread:$0]  (%p2553_p5), %s2972_s23, 16, %s2970_s10, %s1728_s15  }
0x1512 PF: > { %p2157_p0 = scmp.ge.s32.totalorder %s2452_s14, 2  ;;  %s1752_s27 = sand.u32 1, %s2440_s11  }
0x1513   : > { %s1753_s17 = scalar_lea.sflag [#allocation5], %s1752_s27 }
0x1514   : > { %p2152_p1 = pnand %p2157_p0, %p2557_p6 }
0x1516   : > { %2435 = dma.done.wait (!%p2152_p1), %s1753_s17, 16  }
0x1517   : > { %2437 = vsyncadd (!%p2152_p1), %s1753_s17, 4294967280  ;;  %p21_p2 = scmp.ge.s32.totalorder %s2540_s16, 4   ;;  %s3025_s11 = smov %s2444_s12 }
0x1518   : > { %s3026_s12 = smov %s2448_s13  ;;  %s3027_s13 = smov %s2551_s19 }
0x1519   : > { %s3028_s14 = smov %s2540_s16  ;;  %23 = sbr.rel (!%p21_p2) target bundleno = 6 (0x6), region = 116 }
0x1520   :  { %1757 = vsyncpa [#allocation5], 1 }
0x1521   :  { %1759 = vsyncpa [#allocation5 + $0x1], 1 }
0x1522   :  { %1760 = vsyncpa [#allocation6], 1 }
0x1523   :  { %1762 = vsyncpa [#allocation6 + $0x1], 1 }

</bundles_post_ra>
